<compile_context>
chip_gen: v7x
topology: tpu7x:2x2x1
jax: 0.10.0
libtpu: 0.0.40
codegen_flags: <defaults>
</compile_context>

<pallas_src>
import math
import numpy as np
import jax
import jax.numpy as jnp
from jax import lax
from jax.experimental import pallas as pl
from jax.experimental.pallas import tpu as pltpu


def _round_up(x, m):
    return (x + m - 1) // m * m


def _vmem_capacity_bytes():
    try:
        return int(pltpu.get_tpu_info().vmem_capacity_bytes)
    except Exception:
        return None


def _vmem_bytes(tile_t, tb_b, Dx, E, H, Ep, TWp, has_prev, wbytes, wbuf):
    """Rough per-kernel VMEM footprint estimate (bytes)."""
    rows = tile_t * tb_b
    f = 4
    n1 = Ep + TWp
    act = 2 * rows * Dx * f                       # x block (double buffered)
    if has_prev:
        act += 2 * rows * E * f                   # prev_routing block
    act += 2 * rows * (Ep + 128) * f              # packed output block
    act += 4 * tb_b * H * f                       # h0 block + resident hidden block
    scratch = rows * (3 * H + H) * f              # gi slab + hidden-state slab
    weights = (Dx * 3 * H + (E * 3 * H if has_prev else 0)
               + H * 3 * H + H * n1) * wbytes + TWp * 128 * f
    biases = (4 * H + n1 + 128) * f
    return act + scratch + wbuf * (weights + biases)


def _pick_tile_t(T, tb_b, Dx, E, H, Ep, TWp, has_prev, wbytes, wbuf, budget,
                 cap=256):
    """Largest divisor of T (<= cap) whose VMEM footprint fits the budget."""
    best = 1
    for d in range(1, min(T, cap) + 1):
        if T % d == 0 and _vmem_bytes(d, tb_b, Dx, E, H, Ep, TWp, has_prev,
                                      wbytes, wbuf) <= budget:
            best = d
    return best


# ----------------------------------------------------------------------------
# Kernel factory: one grid step == (batch tile bi) x (tile_t timesteps tb).
# ----------------------------------------------------------------------------
def _make_kernel(tile_t, tb_b, H, Ep, has_prev):
    rows = tile_t * tb_b

    def kernel(*refs):
        if has_prev:
            (x_ref, pr_ref, h0_ref, wihx_ref, wihp_ref, whh_ref, bih_ref,
             bhn_ref, w1_ref, b1_ref, w2_ref, b2_ref,
             out_ref, hid_ref, gi_scr, hs_scr) = refs
        else:
            (x_ref, h0_ref, wihx_ref, whh_ref, bih_ref, bhn_ref,
             w1_ref, b1_ref, w2_ref, b2_ref,
             out_ref, hid_ref, gi_scr, hs_scr) = refs
            pr_ref = wihp_ref = None

        tb = pl.program_id(1)

        # New batch tile -> (re)load h0 into the resident carry block; it then
        # persists across the sequential time axis for this batch tile.
        @pl.when(tb == 0)
        def _():
            hid_ref[...] = h0_ref[...]

        wdt = whh_ref.dtype   # weights may be bf16; activations cast at the dot

        # ---- block-batched (non-recurrent) input projection: 1-2 MXU GEMMs.
        x2d = x_ref[...].reshape(rows, x_ref.shape[-1])
        gi = jnp.dot(x2d.astype(wdt), wihx_ref[...],
                     preferred_element_type=jnp.float32) + bih_ref[...]
        if has_prev:
            pr2d = pr_ref[...].reshape(rows, pr_ref.shape[-1])
            gi = gi + jnp.dot(pr2d.astype(wdt), wihp_ref[...],
                              preferred_element_type=jnp.float32)
        gi_scr[...] = gi

        # Loop invariants hoisted out of the serial recurrence.
        whh = whh_ref[...]
        bhn = jnp.broadcast_to(bhn_ref[...], (tb_b, H))

        # ---- serial GRU recurrence (the only truly sequential part).
        def step(t, h):
            r0 = pl.multiple_of(t * tb_b, 8)            # sublane-aligned offset
            gi_t = gi_scr[pl.ds(r0, tb_b), :]           # (tb_b, 3H)
            gh = jnp.dot(h.astype(wdt), whh, preferred_element_type=jnp.float32)
            rz = jax.nn.sigmoid(gi_t[:, :2 * H] + gh[:, :2 * H])   # fused r|z
            r = rz[:, :H]
            z = rz[:, H:]
            n = jnp.tanh(gi_t[:, 2 * H:] + r * (gh[:, 2 * H:] + bhn))
            h_new = (1.0 - z) * n + z * h
            hs_scr[pl.ds(r0, tb_b), :] = h_new
            return h_new

        h_last = lax.fori_loop(0, tile_t, step, hid_ref[...],
                               unroll=min(tile_t, 8))
        hid_ref[...] = h_last                           # carry / final hidden

        # ---- fused heads over the whole block's hidden-state slab (2 GEMMs).
        hs = hs_scr[...]
        a = (jnp.dot(hs.astype(wdt), w1_ref[...],
                     preferred_element_type=jnp.float32) + b1_ref[...])
        routing = a[:, :Ep]                      # 128-aligned view (lanes [0, Ep))
        tail = jnp.maximum(a[:, Ep:], 0.0)       # 128-aligned view (ReLU branch)
        ct = jax.nn.sigmoid(
            jnp.dot(tail, w2_ref[...], preferred_element_type=jnp.float32)
            + b2_ref[...])                       # (rows, 128): col0=comp, col1=topk
        packed = jnp.concatenate([routing, ct], axis=-1)        # (rows, Ep+128)
        out_ref[...] = packed.reshape(tile_t, tb_b, Ep + 128)   # one unmasked store

    return kernel


# ----------------------------------------------------------------------------
# Wrapper: layout / padding / weight fusion / pallas_call plumbing.
# ----------------------------------------------------------------------------
def recursive_routing_gru(x, params, prev_routing=None, hidden=None, *,
                          tile_t=None, batch_tile=None,
                          weight_dtype=jnp.float32,
                          single_buffer_weights=True):
    """x: (B, T, input_dim); prev_routing: (B, T, E) or None; hidden: (1, B, H) or None.
    Returns (routing_logits (B,T,E), complexity (B,T,1), top_k (B,T,1), new_hidden (1,B,H))."""
    f32 = jnp.float32
    B, T, Dx = x.shape
    H = params["whh"].shape[0]
    E = params["wr"].shape[1]
    H2, H4 = H // 2, H // 4
    Ep = _round_up(E, 128)            # routing lanes padded to a full lane group
    TWp = _round_up(H2 + H4, 128)     # fused head-1 "tail" lanes (ReLU branch)
    Wout = Ep + 128                   # packed output: [routing | complexity, top_k]
    n1 = Ep + TWp
    has_prev = prev_routing is not None

    # ---- batch padding to a full sublane group; time-major layout; NO concat.
    Bp = _round_up(B, 8)
    xt = jnp.pad(jnp.transpose(x.astype(f32), (1, 0, 2)),
                 ((0, 0), (0, Bp - B), (0, 0)))                    # (T, Bp, Dx)
    if has_prev:
        prt = jnp.pad(jnp.transpose(prev_routing.astype(f32), (1, 0, 2)),
                      ((0, 0), (0, Bp - B), (0, 0)))               # (T, Bp, E)
    h0 = jnp.zeros((Bp, H), f32)
    if hidden is not None:
        h0 = h0.at[:B].set(hidden[0].astype(f32))

    # ---- batch tiling: >=2 tiles lets the "parallel" axis feed both v7x cores.
    if batch_tile is None:
        batch_tile = Bp // 2 if (Bp >= 16 and (Bp // 2) % 8 == 0) else Bp
    assert Bp % batch_tile == 0 and batch_tile % 8 == 0
    n_bi = Bp // batch_tile

    # ---- weight / bias fusion (once, outside the kernel) --------------------
    wihx = params["wih"][:Dx]                                      # (Dx, 3H)
    wihp = params["wih"][Dx:]                                      # (E, 3H)
    # Fold bhh(r,z) into bih (linear); keep bhn separate (gated by r).
    bih_f = jnp.concatenate(
        [params["bih"][:, :2 * H] + params["bhh"][:, :2 * H],
         params["bih"][:, 2 * H:]], axis=1)                        # (1, 3H)
    bhn = params["bhh"][:, 2 * H:]                                 # (1, H)

    # Head layer-1: [routing (padded to Ep) | wc1 | wk1 | zero pad] -> both the
    # routing slice and the ReLU tail slice start at 128-aligned lanes.
    w1 = jnp.zeros((H, n1), f32)
    w1 = w1.at[:, :E].set(params["wr"])
    w1 = w1.at[:, Ep:Ep + H2].set(params["wc1"])
    w1 = w1.at[:, Ep + H2:Ep + H2 + H4].set(params["wk1"])
    b1 = jnp.zeros((1, n1), f32)
    b1 = b1.at[:, :E].set(params["br"])
    b1 = b1.at[:, Ep:Ep + H2].set(params["bc1"])
    b1 = b1.at[:, Ep + H2:Ep + H2 + H4].set(params["bk1"])
    # Head layer-2: block-diag [wc2 -> col 0 | wk2 -> col 1], lane-padded to 128.
    w2 = jnp.zeros((TWp, 128), f32)
    w2 = w2.at[:H2, 0].set(params["wc2"][:, 0])
    w2 = w2.at[H2:H2 + H4, 1].set(params["wk2"][:, 0])
    b2 = jnp.zeros((1, 128), f32)
    b2 = b2.at[0, 0].set(params["bc2"][0, 0])
    b2 = b2.at[0, 1].set(params["bk2"][0, 0])

    wdt = jnp.dtype(weight_dtype)
    wihx = wihx.astype(wdt)
    whh = params["whh"].astype(wdt)
    w1 = w1.astype(wdt)
    if has_prev:
        wihp = wihp.astype(wdt)

    # ---- VMEM-aware tile_t + explicit scoped-VMEM limit ---------------------
    wbuf = 1 if single_buffer_weights else 2
    cap = _vmem_capacity_bytes()
    budget = int(cap * 0.65) if cap else (40 << 20)   # conservative: fits v7x too
    if tile_t is None:
        tile_t = _pick_tile_t(T, batch_tile, Dx, E, H, Ep, TWp, has_prev,
                              wdt.itemsize, wbuf, budget)
    assert T % tile_t == 0
    n_tb = T // tile_t
    rows = tile_t * batch_tile

    est2 = _vmem_bytes(tile_t, batch_tile, Dx, E, H, Ep, TWp, has_prev,
                       wdt.itemsize, 2)               # covers the fallback path
    hard = int(cap * 0.9) if cap else (96 << 20)
    vmem_limit = int(max(32 << 20, min(int(est2 * 1.25) + (1 << 20), hard)))

    inputs = ([xt] + ([prt] if has_prev else []) + [h0, wihx]
              + ([wihp] if has_prev else []) + [whh, bih_f, bhn, w1, b1, w2, b2])

    kernel = _make_kernel(tile_t, batch_tile, H, Ep, has_prev)

    seq3 = lambda bi, tb: (tb, bi, 0)
    bat2 = lambda bi, tb: (bi, 0)
    cst2 = lambda bi, tb: (0, 0)

    out_shape = [jax.ShapeDtypeStruct((T, Bp, Wout), f32),
                 jax.ShapeDtypeStruct((Bp, H), f32)]
    out_specs = [pl.BlockSpec((tile_t, batch_tile, Wout), seq3),
                 pl.BlockSpec((batch_tile, H), bat2)]   # resident carry / final h

    def call(n_weight_buffers):
        def wspec(shape):
            # Constant-index weights: single-buffer to cut VMEM (they are never
            # re-DMA'd anyway).  n_weight_buffers=None -> default pipelining.
            if n_weight_buffers is None:
                return pl.BlockSpec(shape, cst2)
            return pl.BlockSpec(shape, cst2,
                                pipeline_mode=pl.Buffered(n_weight_buffers))

        in_specs = [pl.BlockSpec((tile_t, batch_tile, Dx), seq3)]
        if has_prev:
            in_specs.append(pl.BlockSpec((tile_t, batch_tile, E), seq3))
        in_specs.append(pl.BlockSpec((batch_tile, H), bat2))        # h0
        in_specs.append(wspec((Dx, 3 * H)))
        if has_prev:
            in_specs.append(wspec((E, 3 * H)))
        in_specs += [wspec((H, 3 * H)), wspec((1, 3 * H)), wspec((1, H)),
                     wspec((H, n1)), wspec((1, n1)),
                     wspec((TWp, 128)), wspec((1, 128))]

        return pl.pallas_call(
            kernel,
            out_shape=out_shape,
            grid_spec=pltpu.PrefetchScalarGridSpec(
                num_scalar_prefetch=0,
                grid=(n_bi, n_tb),
                in_specs=in_specs,
                out_specs=out_specs,
                scratch_shapes=[pltpu.VMEM((rows, 3 * H), f32),   # gi slab
                                pltpu.VMEM((rows, H), f32)]),     # hidden-state slab
            compiler_params=pltpu.CompilerParams(
                # batch tiles are independent ("parallel" -> megacore on v7x);
                # the time axis carries the hidden state -> MUST stay "arbitrary".
                dimension_semantics=("parallel", "arbitrary"),
                vmem_limit_bytes=vmem_limit),
        )(*inputs)

    if single_buffer_weights:
        try:   # pipeline_mode / Buffered(1) may be unsupported on older jax
            outs = jax.block_until_ready(call(1))
        except Exception:
            outs = call(None)
    else:
        outs = call(None)
    out_slab, h_final = outs

    out = jnp.transpose(out_slab, (1, 0, 2))[:B]        # (B, T, Wout), de-pad batch
    routing = out[..., :E]
    comp = out[..., Ep:Ep + 1]
    topk = out[..., Ep + 1:Ep + 2]
    new_hidden = h_final[:B][None]                      # (1, B, H)
    return routing, comp, topk, new_hidden


# ----------------------------------------------------------------------------
# Deterministic parameter init (shapes follow RecursiveRoutingGRU.__init__).
# ----------------------------------------------------------------------------
def init_params(key, input_dim, hidden_dim, num_experts):
    Din = input_dim + num_experts
    H = hidden_dim
    ks = jax.random.split(key, 16)

    def u(k, shape, fan_in):
        b = 1.0 / math.sqrt(fan_in)
        return jax.random.uniform(k, shape, jnp.float32, -b, b)

    return dict(
        # GRU (weights stored transposed vs PyTorch: (in, 3H)), gate order r,z,n
        wih=u(ks[0], (Din, 3 * H), H),
        whh=u(ks[1], (H, 3 * H), H),
        bih=u(ks[2], (1, 3 * H), H),
        bhh=u(ks[3], (1, 3 * H), H),
        # routing_head
        wr=u(ks[4], (H, num_experts), H),
        br=u(ks[5], (1, num_experts), H),
        # complexity_estimator
        wc1=u(ks[6], (H, H // 2), H),
        bc1=u(ks[7], (1, H // 2), H),
        wc2=u(ks[8], (H // 2, 1), H // 2),
        bc2=u(ks[9], (1, 1), H // 2),
        # top_k_head
        wk1=u(ks[10], (H, H // 4), H),
        bk1=u(ks[11], (1, H // 4), H),
        wk2=u(ks[12], (H // 4, 1), H // 4),
        bk2=u(ks[13], (1, 1), H // 4),
    )


# ----------------------------------------------------------------------------
# Pure-JAX reference for correctness checking.
# ----------------------------------------------------------------------------
def ref_forward(x, params, prev_routing, hidden):
    B, T, _ = x.shape
    H = params["whh"].shape[0]
    E = params["wr"].shape[1]
    if prev_routing is None:
        prev_routing = jnp.zeros((B, T, E), x.dtype)
    gru_in = jnp.concatenate([x, prev_routing], axis=-1).astype(jnp.float32)
    h0 = jnp.zeros((B, H), jnp.float32) if hidden is None else hidden[0].astype(jnp.float32)

    def step(h, xt):
        gi = xt @ params["wih"] + params["bih"][0]
        gh = h @ params["whh"] + params["bhh"][0]
        r = jax.nn.sigmoid(gi[:, :H] + gh[:, :H])
        z = jax.nn.sigmoid(gi[:, H:2 * H] + gh[:, H:2 * H])
        n = jnp.tanh(gi[:, 2 * H:] + r * gh[:, 2 * H:])
        h_new = (1.0 - z) * n + z * h
        return h_new, h_new

    hT, hs = jax.lax.scan(step, h0, jnp.transpose(gru_in, (1, 0, 2)))
    go = jnp.transpose(hs, (1, 0, 2))                     # (B, T, H)
    routing = go @ params["wr"] + params["br"][0]
    comp = jax.nn.sigmoid(
        jnp.maximum(go @ params["wc1"] + params["bc1"][0], 0.0) @ params["wc2"]
        + params["bc2"][0])
    topk = jax.nn.sigmoid(
        jnp.maximum(go @ params["wk1"] + params["bk1"][0], 0.0) @ params["wk2"]
        + params["bk2"][0])
    return routing, comp, topk, hT[None]


if __name__ == "__main__":
    B, T = 2, 16
    input_dim, hidden_dim, num_experts = 32, 32, 4

    key = jax.random.PRNGKey(0)
    kx, kr, kp = jax.random.split(key, 3)
    x = jax.random.normal(kx, (B, T, input_dim), jnp.float32)
    prev_routing = jax.nn.softmax(
        jax.random.normal(kr, (B, T, num_experts), jnp.float32), axis=-1)
    params = init_params(kp, input_dim, hidden_dim, num_experts)

    # 1) prev_routing provided, tile_t=4 -> 4 time blocks: exercises the
    #    cross-block resident hidden carry and batch padding (B=2 -> Bp=8).
    outs = recursive_routing_gru(x, params, prev_routing=prev_routing,
                                 hidden=None, tile_t=4)
    outs = jax.block_until_ready(outs)
    routing, comp, topk, new_hidden = outs

    r_ref, c_ref, k_ref, h_ref = ref_forward(x, params, prev_routing, None)
    np.testing.assert_allclose(np.asarray(routing), np.asarray(r_ref), rtol=1e-3, atol=1e-3)
    np.testing.assert_allclose(np.asarray(comp), np.asarray(c_ref), rtol=1e-3, atol=1e-3)
    np.testing.assert_allclose(np.asarray(topk), np.asarray(k_ref), rtol=1e-3, atol=1e-3)
    np.testing.assert_allclose(np.asarray(new_hidden), np.asarray(h_ref), rtol=1e-3, atol=1e-3)

    assert routing.shape == (B, T, num_experts)
    assert comp.shape == (B, T, 1)
    assert topk.shape == (B, T, 1)
    assert new_hidden.shape == (1, B, hidden_dim)

    # 2) prev_routing=None path (skips the prev GEMM) + provided hidden state,
    #    auto (VMEM-aware) tile_t selection.
    hidden0 = 0.1 * jax.random.normal(jax.random.PRNGKey(1), (1, B, hidden_dim), jnp.float32)
    outs2 = recursive_routing_gru(x, params, prev_routing=None, hidden=hidden0)
    outs2 = jax.block_until_ready(outs2)
    r2, c2, k2, h2 = outs2
    r_ref2, c_ref2, k_ref2, h_ref2 = ref_forward(x, params, None, hidden0)
    np.testing.assert_allclose(np.asarray(r2), np.asarray(r_ref2), rtol=1e-3, atol=1e-3)
    np.testing.assert_allclose(np.asarray(c2), np.asarray(c_ref2), rtol=1e-3, atol=1e-3)
    np.testing.assert_allclose(np.asarray(k2), np.asarray(k_ref2), rtol=1e-3, atol=1e-3)
    np.testing.assert_allclose(np.asarray(h2), np.asarray(h_ref2), rtol=1e-3, atol=1e-3)

    print("KERNEL_OK")
</pallas_src>

<mosaic_0001>
module attributes {stable_mosaic.version = 11 : i64} {
  func.func @kernel(%arg0: i32, %arg1: i32, %arg2: memref<4x8x32xf32, #tpu.memory_space<vmem>>, %arg3: memref<4x8x4xf32, #tpu.memory_space<vmem>>, %arg4: memref<8x32xf32, #tpu.memory_space<vmem>>, %arg5: memref<32x96xf32, #tpu.memory_space<vmem>>, %arg6: memref<4x96xf32, #tpu.memory_space<vmem>>, %arg7: memref<32x96xf32, #tpu.memory_space<vmem>>, %arg8: memref<1x96xf32, #tpu.memory_space<vmem>>, %arg9: memref<1x32xf32, #tpu.memory_space<vmem>>, %arg10: memref<32x256xf32, #tpu.memory_space<vmem>>, %arg11: memref<1x256xf32, #tpu.memory_space<vmem>>, %arg12: memref<128x128xf32, #tpu.memory_space<vmem>>, %arg13: memref<1x128xf32, #tpu.memory_space<vmem>>, %arg14: memref<4x8x256xf32, #tpu.memory_space<vmem>>, %arg15: memref<8x32xf32, #tpu.memory_space<vmem>>, %arg16: memref<32x96xf32, #tpu.memory_space<vmem>>, %arg17: memref<32x32xf32, #tpu.memory_space<vmem>>) attributes {dimension_semantics = [#tpu.dimension_semantics<parallel>, #tpu.dimension_semantics<arbitrary>], iteration_bounds = array<i64: 1, 4>, scalar_prefetch = 0 : i64, scratch_operands = 2 : i64, tpu.core_type = #tpu.core_type<tc>, window_params = [{transform_indices = @transform_0, window_bounds = array<i64: 4, 8, 32>}, {transform_indices = @transform_1, window_bounds = array<i64: 4, 8, 4>}, {transform_indices = @transform_2, window_bounds = array<i64: 8, 32>}, {pipeline_mode = #tpu.pipeline_mode<synchronous>, transform_indices = @transform_3, window_bounds = array<i64: 32, 96>}, {pipeline_mode = #tpu.pipeline_mode<synchronous>, transform_indices = @transform_4, window_bounds = array<i64: 4, 96>}, {pipeline_mode = #tpu.pipeline_mode<synchronous>, transform_indices = @transform_5, window_bounds = array<i64: 32, 96>}, {pipeline_mode = #tpu.pipeline_mode<synchronous>, transform_indices = @transform_6, window_bounds = array<i64: 1, 96>}, {pipeline_mode = #tpu.pipeline_mode<synchronous>, transform_indices = @transform_7, window_bounds = array<i64: 1, 32>}, {pipeline_mode = #tpu.pipeline_mode<synchronous>, transform_indices = @transform_8, window_bounds = array<i64: 32, 256>}, {pipeline_mode = #tpu.pipeline_mode<synchronous>, transform_indices = @transform_9, window_bounds = array<i64: 1, 256>}, {pipeline_mode = #tpu.pipeline_mode<synchronous>, transform_indices = @transform_10, window_bounds = array<i64: 128, 128>}, {pipeline_mode = #tpu.pipeline_mode<synchronous>, transform_indices = @transform_11, window_bounds = array<i64: 1, 128>}, {transform_indices = @transform_12, window_bounds = array<i64: 4, 8, 256>}, {transform_indices = @transform_13, window_bounds = array<i64: 8, 32>}]} {
    %c0_i32 = arith.constant 0 : i32
    %0 = arith.cmpi eq, %arg1, %c0_i32 : i32
    %1 = arith.extui %0 : i1 to i32
    %c0_i32_0 = arith.constant 0 : i32
    %2 = arith.cmpi ne, %1, %c0_i32_0 : i32
    scf.if %2 {
      %c0_64 = arith.constant 0 : index
      %c0_65 = arith.constant 0 : index
      %157 = vector.load %arg4[%c0_64, %c0_65] : memref<8x32xf32, #tpu.memory_space<vmem>>, vector<8x32xf32>
      %c0_66 = arith.constant 0 : index
      %c0_67 = arith.constant 0 : index
      %158 = vector.load %arg15[%c0_66, %c0_67] : memref<8x32xf32, #tpu.memory_space<vmem>>, vector<8x32xf32>
      tpu.vector_store %arg15[%c0_66, %c0_67], %157 {strides = array<i32>} : memref<8x32xf32, #tpu.memory_space<vmem>>, vector<8x32xf32>,
    } else {
    }
    %c0 = arith.constant 0 : index
    %c0_1 = arith.constant 0 : index
    %c0_2 = arith.constant 0 : index
    %3 = vector.load %arg2[%c0, %c0_1, %c0_2] : memref<4x8x32xf32, #tpu.memory_space<vmem>>, vector<4x8x32xf32>
    %4 = vector.shape_cast %3 : vector<4x8x32xf32> to vector<32x32xf32>
    %c0_3 = arith.constant 0 : index
    %c0_4 = arith.constant 0 : index
    %5 = vector.load %arg5[%c0_3, %c0_4] : memref<32x96xf32, #tpu.memory_space<vmem>>, vector<32x96xf32>
    %cst = arith.constant dense<0.000000e+00> : vector<32x96xf32>
    %6 = tpu.matmul %4, %5, %cst {dimension_numbers = #tpu.dot_dimension_numbers<[1], [0], [0], [1], [0, 0, 1, 1], [], []>} : vector<32x32xf32>, vector<32x96xf32>, vector<32x96xf32> -> vector<32x96xf32>
    %c0_5 = arith.constant 0 : index
    %c0_6 = arith.constant 0 : index
    %7 = vector.load %arg8[%c0_5, %c0_6] : memref<1x96xf32, #tpu.memory_space<vmem>>, vector<1x96xf32>
    %8 = vector.broadcast %7 : vector<1x96xf32> to vector<32x96xf32>
    %9 = arith.addf %6, %8 : vector<32x96xf32>
    %c0_7 = arith.constant 0 : index
    %c0_8 = arith.constant 0 : index
    %c0_9 = arith.constant 0 : index
    %10 = vector.load %arg3[%c0_7, %c0_8, %c0_9] : memref<4x8x4xf32, #tpu.memory_space<vmem>>, vector<4x8x4xf32>
    %11 = vector.shape_cast %10 : vector<4x8x4xf32> to vector<32x4xf32>
    %c0_10 = arith.constant 0 : index
    %c0_11 = arith.constant 0 : index
    %12 = vector.load %arg6[%c0_10, %c0_11] : memref<4x96xf32, #tpu.memory_space<vmem>>, vector<4x96xf32>
    %cst_12 = arith.constant dense<0.000000e+00> : vector<32x96xf32>
    %13 = tpu.matmul %11, %12, %cst_12 {dimension_numbers = #tpu.dot_dimension_numbers<[1], [0], [0], [1], [0, 0, 1, 1], [], []>} : vector<32x4xf32>, vector<4x96xf32>, vector<32x96xf32> -> vector<32x96xf32>
    %14 = arith.addf %9, %13 : vector<32x96xf32>
    %c0_13 = arith.constant 0 : index
    %c0_14 = arith.constant 0 : index
    %15 = vector.load %arg16[%c0_13, %c0_14] : memref<32x96xf32, #tpu.memory_space<vmem>>, vector<32x96xf32>
    tpu.vector_store %arg16[%c0_13, %c0_14], %14 {strides = array<i32>} : memref<32x96xf32, #tpu.memory_space<vmem>>, vector<32x96xf32>,
    %c0_15 = arith.constant 0 : index
    %c0_16 = arith.constant 0 : index
    %16 = vector.load %arg7[%c0_15, %c0_16] : memref<32x96xf32, #tpu.memory_space<vmem>>, vector<32x96xf32>
    %c0_17 = arith.constant 0 : index
    %c0_18 = arith.constant 0 : index
    %17 = vector.load %arg9[%c0_17, %c0_18] : memref<1x32xf32, #tpu.memory_space<vmem>>, vector<1x32xf32>
    %18 = vector.shape_cast %17 : vector<1x32xf32> to vector<1x32xf32>
    %19 = vector.broadcast %18 : vector<1x32xf32> to vector<8x32xf32>
    %c0_19 = arith.constant 0 : index
    %c0_20 = arith.constant 0 : index
    %20 = vector.load %arg15[%c0_19, %c0_20] : memref<8x32xf32, #tpu.memory_space<vmem>>, vector<8x32xf32>
    %c0_i32_21 = arith.constant 0 : i32
    %c8_i32 = arith.constant 8 : i32
    %21 = arith.muli %c0_i32_21, %c8_i32 : i32
    %22 = tpu.assume_multiple %21, 8 : i32
    %23 = arith.index_cast %22 : i32 to index
    %c0_22 = arith.constant 0 : index
    %24 = vector.load %arg16[%23, %c0_22] : memref<32x96xf32, #tpu.memory_space<vmem>>, vector<8x96xf32>
    %cst_23 = arith.constant dense<0.000000e+00> : vector<8x96xf32>
    %25 = tpu.matmul %20, %16, %cst_23 {dimension_numbers = #tpu.dot_dimension_numbers<[1], [0], [0], [1], [0, 0, 1, 1], [], []>} : vector<8x32xf32>, vector<32x96xf32>, vector<8x96xf32> -> vector<8x96xf32>
    %26 = vector.extract_strided_slice %24 {offsets = [0, 0], sizes = [8, 64], strides = [1, 1]} : vector<8x96xf32> to vector<8x64xf32>
    %27 = vector.extract_strided_slice %25 {offsets = [0, 0], sizes = [8, 64], strides = [1, 1]} : vector<8x96xf32> to vector<8x64xf32>
    %28 = arith.addf %26, %27 : vector<8x64xf32>
    %29 = arith.negf %28 : vector<8x64xf32>
    %30 = math.exp %29 : vector<8x64xf32>
    %cst_24 = arith.constant 1.000000e+00 : f32
    %31 = vector.broadcast %cst_24 : f32 to vector<8x64xf32>
    %32 = arith.addf %31, %30 : vector<8x64xf32>
    %33 = arith.divf %31, %32 : vector<8x64xf32>
    %34 = vector.extract_strided_slice %33 {offsets = [0, 0], sizes = [8, 32], strides = [1, 1]} : vector<8x64xf32> to vector<8x32xf32>
    %35 = vector.extract_strided_slice %33 {offsets = [0, 32], sizes = [8, 32], strides = [1, 1]} : vector<8x64xf32> to vector<8x32xf32>
    %36 = vector.extract_strided_slice %24 {offsets = [0, 64], sizes = [8, 32], strides = [1, 1]} : vector<8x96xf32> to vector<8x32xf32>
    %37 = vector.extract_strided_slice %25 {offsets = [0, 64], sizes = [8, 32], strides = [1, 1]} : vector<8x96xf32> to vector<8x32xf32>
    %38 = arith.addf %37, %19 : vector<8x32xf32>
    %39 = arith.mulf %34, %38 : vector<8x32xf32>
    %40 = arith.addf %36, %39 : vector<8x32xf32>
    %41 = math.tanh %40 : vector<8x32xf32>
    %cst_25 = arith.constant 1.000000e+00 : f32
    %42 = vector.broadcast %cst_25 : f32 to vector<8x32xf32>
    %43 = arith.subf %42, %35 : vector<8x32xf32>
    %44 = arith.mulf %43, %41 : vector<8x32xf32>
    %45 = arith.mulf %35, %20 : vector<8x32xf32>
    %46 = arith.addf %44, %45 : vector<8x32xf32>
    %47 = arith.index_cast %22 : i32 to index
    %c0_26 = arith.constant 0 : index
    %48 = vector.load %arg17[%47, %c0_26] : memref<32x32xf32, #tpu.memory_space<vmem>>, vector<8x32xf32>
    tpu.vector_store %arg17[%47, %c0_26], %46 {strides = array<i32>} : memref<32x32xf32, #tpu.memory_space<vmem>>, vector<8x32xf32>,
    %c1_i32 = arith.constant 1 : i32
    %c8_i32_27 = arith.constant 8 : i32
    %49 = arith.muli %c1_i32, %c8_i32_27 : i32
    %50 = tpu.assume_multiple %49, 8 : i32
    %51 = arith.index_cast %50 : i32 to index
    %c0_28 = arith.constant 0 : index
    %52 = vector.load %arg16[%51, %c0_28] : memref<32x96xf32, #tpu.memory_space<vmem>>, vector<8x96xf32>
    %cst_29 = arith.constant dense<0.000000e+00> : vector<8x96xf32>
    %53 = tpu.matmul %46, %16, %cst_29 {dimension_numbers = #tpu.dot_dimension_numbers<[1], [0], [0], [1], [0, 0, 1, 1], [], []>} : vector<8x32xf32>, vector<32x96xf32>, vector<8x96xf32> -> vector<8x96xf32>
    %54 = vector.extract_strided_slice %52 {offsets = [0, 0], sizes = [8, 64], strides = [1, 1]} : vector<8x96xf32> to vector<8x64xf32>
    %55 = vector.extract_strided_slice %53 {offsets = [0, 0], sizes = [8, 64], strides = [1, 1]} : vector<8x96xf32> to vector<8x64xf32>
    %56 = arith.addf %54, %55 : vector<8x64xf32>
    %57 = arith.negf %56 : vector<8x64xf32>
    %58 = math.exp %57 : vector<8x64xf32>
    %cst_30 = arith.constant 1.000000e+00 : f32
    %59 = vector.broadcast %cst_30 : f32 to vector<8x64xf32>
    %60 = arith.addf %59, %58 : vector<8x64xf32>
    %61 = arith.divf %59, %60 : vector<8x64xf32>
    %62 = vector.extract_strided_slice %61 {offsets = [0, 0], sizes = [8, 32], strides = [1, 1]} : vector<8x64xf32> to vector<8x32xf32>
    %63 = vector.extract_strided_slice %61 {offsets = [0, 32], sizes = [8, 32], strides = [1, 1]} : vector<8x64xf32> to vector<8x32xf32>
    %64 = vector.extract_strided_slice %52 {offsets = [0, 64], sizes = [8, 32], strides = [1, 1]} : vector<8x96xf32> to vector<8x32xf32>
    %65 = vector.extract_strided_slice %53 {offsets = [0, 64], sizes = [8, 32], strides = [1, 1]} : vector<8x96xf32> to vector<8x32xf32>
    %66 = arith.addf %65, %19 : vector<8x32xf32>
    %67 = arith.mulf %62, %66 : vector<8x32xf32>
    %68 = arith.addf %64, %67 : vector<8x32xf32>
    %69 = math.tanh %68 : vector<8x32xf32>
    %cst_31 = arith.constant 1.000000e+00 : f32
    %70 = vector.broadcast %cst_31 : f32 to vector<8x32xf32>
    %71 = arith.subf %70, %63 : vector<8x32xf32>
    %72 = arith.mulf %71, %69 : vector<8x32xf32>
    %73 = arith.mulf %63, %46 : vector<8x32xf32>
    %74 = arith.addf %72, %73 : vector<8x32xf32>
    %75 = arith.index_cast %50 : i32 to index
    %c0_32 = arith.constant 0 : index
    %76 = vector.load %arg17[%75, %c0_32] : memref<32x32xf32, #tpu.memory_space<vmem>>, vector<8x32xf32>
    tpu.vector_store %arg17[%75, %c0_32], %74 {strides = array<i32>} : memref<32x32xf32, #tpu.memory_space<vmem>>, vector<8x32xf32>,
    %c2_i32 = arith.constant 2 : i32
    %c8_i32_33 = arith.constant 8 : i32
    %77 = arith.muli %c2_i32, %c8_i32_33 : i32
    %78 = tpu.assume_multiple %77, 8 : i32
    %79 = arith.index_cast %78 : i32 to index
    %c0_34 = arith.constant 0 : index
    %80 = vector.load %arg16[%79, %c0_34] : memref<32x96xf32, #tpu.memory_space<vmem>>, vector<8x96xf32>
    %cst_35 = arith.constant dense<0.000000e+00> : vector<8x96xf32>
    %81 = tpu.matmul %74, %16, %cst_35 {dimension_numbers = #tpu.dot_dimension_numbers<[1], [0], [0], [1], [0, 0, 1, 1], [], []>} : vector<8x32xf32>, vector<32x96xf32>, vector<8x96xf32> -> vector<8x96xf32>
    %82 = vector.extract_strided_slice %80 {offsets = [0, 0], sizes = [8, 64], strides = [1, 1]} : vector<8x96xf32> to vector<8x64xf32>
    %83 = vector.extract_strided_slice %81 {offsets = [0, 0], sizes = [8, 64], strides = [1, 1]} : vector<8x96xf32> to vector<8x64xf32>
    %84 = arith.addf %82, %83 : vector<8x64xf32>
    %85 = arith.negf %84 : vector<8x64xf32>
    %86 = math.exp %85 : vector<8x64xf32>
    %cst_36 = arith.constant 1.000000e+00 : f32
    %87 = vector.broadcast %cst_36 : f32 to vector<8x64xf32>
    %88 = arith.addf %87, %86 : vector<8x64xf32>
    %89 = arith.divf %87, %88 : vector<8x64xf32>
    %90 = vector.extract_strided_slice %89 {offsets = [0, 0], sizes = [8, 32], strides = [1, 1]} : vector<8x64xf32> to vector<8x32xf32>
    %91 = vector.extract_strided_slice %89 {offsets = [0, 32], sizes = [8, 32], strides = [1, 1]} : vector<8x64xf32> to vector<8x32xf32>
    %92 = vector.extract_strided_slice %80 {offsets = [0, 64], sizes = [8, 32], strides = [1, 1]} : vector<8x96xf32> to vector<8x32xf32>
    %93 = vector.extract_strided_slice %81 {offsets = [0, 64], sizes = [8, 32], strides = [1, 1]} : vector<8x96xf32> to vector<8x32xf32>
    %94 = arith.addf %93, %19 : vector<8x32xf32>
    %95 = arith.mulf %90, %94 : vector<8x32xf32>
    %96 = arith.addf %92, %95 : vector<8x32xf32>
    %97 = math.tanh %96 : vector<8x32xf32>
    %cst_37 = arith.constant 1.000000e+00 : f32
    %98 = vector.broadcast %cst_37 : f32 to vector<8x32xf32>
    %99 = arith.subf %98, %91 : vector<8x32xf32>
    %100 = arith.mulf %99, %97 : vector<8x32xf32>
    %101 = arith.mulf %91, %74 : vector<8x32xf32>
    %102 = arith.addf %100, %101 : vector<8x32xf32>
    %103 = arith.index_cast %78 : i32 to index
    %c0_38 = arith.constant 0 : index
    %104 = vector.load %arg17[%103, %c0_38] : memref<32x32xf32, #tpu.memory_space<vmem>>, vector<8x32xf32>
    tpu.vector_store %arg17[%103, %c0_38], %102 {strides = array<i32>} : memref<32x32xf32, #tpu.memory_space<vmem>>, vector<8x32xf32>,
    %c3_i32 = arith.constant 3 : i32
    %c8_i32_39 = arith.constant 8 : i32
    %105 = arith.muli %c3_i32, %c8_i32_39 : i32
    %106 = tpu.assume_multiple %105, 8 : i32
    %107 = arith.index_cast %106 : i32 to index
    %c0_40 = arith.constant 0 : index
    %108 = vector.load %arg16[%107, %c0_40] : memref<32x96xf32, #tpu.memory_space<vmem>>, vector<8x96xf32>
    %cst_41 = arith.constant dense<0.000000e+00> : vector<8x96xf32>
    %109 = tpu.matmul %102, %16, %cst_41 {dimension_numbers = #tpu.dot_dimension_numbers<[1], [0], [0], [1], [0, 0, 1, 1], [], []>} : vector<8x32xf32>, vector<32x96xf32>, vector<8x96xf32> -> vector<8x96xf32>
    %110 = vector.extract_strided_slice %108 {offsets = [0, 0], sizes = [8, 64], strides = [1, 1]} : vector<8x96xf32> to vector<8x64xf32>
    %111 = vector.extract_strided_slice %109 {offsets = [0, 0], sizes = [8, 64], strides = [1, 1]} : vector<8x96xf32> to vector<8x64xf32>
    %112 = arith.addf %110, %111 : vector<8x64xf32>
    %113 = arith.negf %112 : vector<8x64xf32>
    %114 = math.exp %113 : vector<8x64xf32>
    %cst_42 = arith.constant 1.000000e+00 : f32
    %115 = vector.broadcast %cst_42 : f32 to vector<8x64xf32>
    %116 = arith.addf %115, %114 : vector<8x64xf32>
    %117 = arith.divf %115, %116 : vector<8x64xf32>
    %118 = vector.extract_strided_slice %117 {offsets = [0, 0], sizes = [8, 32], strides = [1, 1]} : vector<8x64xf32> to vector<8x32xf32>
    %119 = vector.extract_strided_slice %117 {offsets = [0, 32], sizes = [8, 32], strides = [1, 1]} : vector<8x64xf32> to vector<8x32xf32>
    %120 = vector.extract_strided_slice %108 {offsets = [0, 64], sizes = [8, 32], strides = [1, 1]} : vector<8x96xf32> to vector<8x32xf32>
    %121 = vector.extract_strided_slice %109 {offsets = [0, 64], sizes = [8, 32], strides = [1, 1]} : vector<8x96xf32> to vector<8x32xf32>
    %122 = arith.addf %121, %19 : vector<8x32xf32>
    %123 = arith.mulf %118, %122 : vector<8x32xf32>
    %124 = arith.addf %120, %123 : vector<8x32xf32>
    %125 = math.tanh %124 : vector<8x32xf32>
    %cst_43 = arith.constant 1.000000e+00 : f32
    %126 = vector.broadcast %cst_43 : f32 to vector<8x32xf32>
    %127 = arith.subf %126, %119 : vector<8x32xf32>
    %128 = arith.mulf %127, %125 : vector<8x32xf32>
    %129 = arith.mulf %119, %102 : vector<8x32xf32>
    %130 = arith.addf %128, %129 : vector<8x32xf32>
    %131 = arith.index_cast %106 : i32 to index
    %c0_44 = arith.constant 0 : index
    %132 = vector.load %arg17[%131, %c0_44] : memref<32x32xf32, #tpu.memory_space<vmem>>, vector<8x32xf32>
    tpu.vector_store %arg17[%131, %c0_44], %130 {strides = array<i32>} : memref<32x32xf32, #tpu.memory_space<vmem>>, vector<8x32xf32>,
    %c4_i32 = arith.constant 4 : i32
    %c0_45 = arith.constant 0 : index
    %c0_46 = arith.constant 0 : index
    %133 = vector.load %arg15[%c0_45, %c0_46] : memref<8x32xf32, #tpu.memory_space<vmem>>, vector<8x32xf32>
    tpu.vector_store %arg15[%c0_45, %c0_46], %130 {strides = array<i32>} : memref<8x32xf32, #tpu.memory_space<vmem>>, vector<8x32xf32>,
    %c0_47 = arith.constant 0 : index
    %c0_48 = arith.constant 0 : index
    %134 = vector.load %arg17[%c0_47, %c0_48] : memref<32x32xf32, #tpu.memory_space<vmem>>, vector<32x32xf32>
    %c0_49 = arith.constant 0 : index
    %c0_50 = arith.constant 0 : index
    %135 = vector.load %arg10[%c0_49, %c0_50] : memref<32x256xf32, #tpu.memory_space<vmem>>, vector<32x256xf32>
    %cst_51 = arith.constant dense<0.000000e+00> : vector<32x256xf32>
    %136 = tpu.matmul %134, %135, %cst_51 {dimension_numbers = #tpu.dot_dimension_numbers<[1], [0], [0], [1], [0, 0, 1, 1], [], []>} : vector<32x32xf32>, vector<32x256xf32>, vector<32x256xf32> -> vector<32x256xf32>
    %c0_52 = arith.constant 0 : index
    %c0_53 = arith.constant 0 : index
    %137 = vector.load %arg11[%c0_52, %c0_53] : memref<1x256xf32, #tpu.memory_space<vmem>>, vector<1x256xf32>
    %138 = vector.broadcast %137 : vector<1x256xf32> to vector<32x256xf32>
    %139 = arith.addf %136, %138 : vector<32x256xf32>
    %140 = vector.extract_strided_slice %139 {offsets = [0, 0], sizes = [32, 128], strides = [1, 1]} : vector<32x256xf32> to vector<32x128xf32>
    %141 = vector.extract_strided_slice %139 {offsets = [0, 128], sizes = [32, 128], strides = [1, 1]} : vector<32x256xf32> to vector<32x128xf32>
    %cst_54 = arith.constant 0.000000e+00 : f32
    %142 = vector.broadcast %cst_54 : f32 to vector<32x128xf32>
    %143 = arith.maximumf %141, %142 : vector<32x128xf32>
    %c0_55 = arith.constant 0 : index
    %c0_56 = arith.constant 0 : index
    %144 = vector.load %arg12[%c0_55, %c0_56] : memref<128x128xf32, #tpu.memory_space<vmem>>, vector<128x128xf32>
    %cst_57 = arith.constant dense<0.000000e+00> : vector<32x128xf32>
    %145 = tpu.matmul %143, %144, %cst_57 {dimension_numbers = #tpu.dot_dimension_numbers<[1], [0], [0], [1], [0, 0, 1, 1], [], []>} : vector<32x128xf32>, vector<128x128xf32>, vector<32x128xf32> -> vector<32x128xf32>
    %c0_58 = arith.constant 0 : index
    %c0_59 = arith.constant 0 : index
    %146 = vector.load %arg13[%c0_58, %c0_59] : memref<1x128xf32, #tpu.memory_space<vmem>>, vector<1x128xf32>
    %147 = vector.broadcast %146 : vector<1x128xf32> to vector<32x128xf32>
    %148 = arith.addf %145, %147 : vector<32x128xf32>
    %149 = arith.negf %148 : vector<32x128xf32>
    %150 = math.exp %149 : vector<32x128xf32>
    %cst_60 = arith.constant 1.000000e+00 : f32
    %151 = vector.broadcast %cst_60 : f32 to vector<32x128xf32>
    %152 = arith.addf %151, %150 : vector<32x128xf32>
    %153 = arith.divf %151, %152 : vector<32x128xf32>
    %154 = tpu.concatenate %140, %153 in 1 : vector<32x128xf32>, vector<32x128xf32> -> vector<32x256xf32>
    %155 = vector.shape_cast %154 : vector<32x256xf32> to vector<4x8x256xf32>
    %c0_61 = arith.constant 0 : index
    %c0_62 = arith.constant 0 : index
    %c0_63 = arith.constant 0 : index
    %156 = vector.load %arg14[%c0_61, %c0_62, %c0_63] : memref<4x8x256xf32, #tpu.memory_space<vmem>>, vector<4x8x256xf32>
    tpu.vector_store %arg14[%c0_61, %c0_62, %c0_63], %155 {strides = array<i32>} : memref<4x8x256xf32, #tpu.memory_space<vmem>>, vector<4x8x256xf32>,
    return
  }
  func.func @transform_0(%arg0: i32, %arg1: i32) -> (i32, i32, i32) {
    %c0_i32 = arith.constant 0 : i32
    %c0_i32_0 = arith.constant 0 : i32
    return %arg1, %arg0, %c0_i32 : i32, i32, i32
  }
  func.func @transform_1(%arg0: i32, %arg1: i32) -> (i32, i32, i32) {
    %c0_i32 = arith.constant 0 : i32
    %c0_i32_0 = arith.constant 0 : i32
    return %arg1, %arg0, %c0_i32 : i32, i32, i32
  }
  func.func @transform_2(%arg0: i32, %arg1: i32) -> (i32, i32) {
    %c0_i32 = arith.constant 0 : i32
    %c0_i32_0 = arith.constant 0 : i32
    return %arg0, %c0_i32 : i32, i32
  }
  func.func @transform_3(%arg0: i32, %arg1: i32) -> (i32, i32) {
    %c0_i32 = arith.constant 0 : i32
    %c0_i32_0 = arith.constant 0 : i32
    %c0_i32_1 = arith.constant 0 : i32
    return %c0_i32, %c0_i32_0 : i32, i32
  }
  func.func @transform_4(%arg0: i32, %arg1: i32) -> (i32, i32) {
    %c0_i32 = arith.constant 0 : i32
    %c0_i32_0 = arith.constant 0 : i32
    %c0_i32_1 = arith.constant 0 : i32
    return %c0_i32, %c0_i32_0 : i32, i32
  }
  func.func @transform_5(%arg0: i32, %arg1: i32) -> (i32, i32) {
    %c0_i32 = arith.constant 0 : i32
    %c0_i32_0 = arith.constant 0 : i32
    %c0_i32_1 = arith.constant 0 : i32
    return %c0_i32, %c0_i32_0 : i32, i32
  }
  func.func @transform_6(%arg0: i32, %arg1: i32) -> (i32, i32) {
    %c0_i32 = arith.constant 0 : i32
    %c0_i32_0 = arith.constant 0 : i32
    %c0_i32_1 = arith.constant 0 : i32
    return %c0_i32, %c0_i32_0 : i32, i32
  }
  func.func @transform_7(%arg0: i32, %arg1: i32) -> (i32, i32) {
    %c0_i32 = arith.constant 0 : i32
    %c0_i32_0 = arith.constant 0 : i32
    %c0_i32_1 = arith.constant 0 : i32
    return %c0_i32, %c0_i32_0 : i32, i32
  }
  func.func @transform_8(%arg0: i32, %arg1: i32) -> (i32, i32) {
    %c0_i32 = arith.constant 0 : i32
    %c0_i32_0 = arith.constant 0 : i32
    %c0_i32_1 = arith.constant 0 : i32
    return %c0_i32, %c0_i32_0 : i32, i32
  }
  func.func @transform_9(%arg0: i32, %arg1: i32) -> (i32, i32) {
    %c0_i32 = arith.constant 0 : i32
    %c0_i32_0 = arith.constant 0 : i32
    %c0_i32_1 = arith.constant 0 : i32
    return %c0_i32, %c0_i32_0 : i32, i32
  }
  func.func @transform_10(%arg0: i32, %arg1: i32) -> (i32, i32) {
    %c0_i32 = arith.constant 0 : i32
    %c0_i32_0 = arith.constant 0 : i32
    %c0_i32_1 = arith.constant 0 : i32
    return %c0_i32, %c0_i32_0 : i32, i32
  }
  func.func @transform_11(%arg0: i32, %arg1: i32) -> (i32, i32) {
    %c0_i32 = arith.constant 0 : i32
    %c0_i32_0 = arith.constant 0 : i32
    %c0_i32_1 = arith.constant 0 : i32
    return %c0_i32, %c0_i32_0 : i32, i32
  }
  func.func @transform_12(%arg0: i32, %arg1: i32) -> (i32, i32, i32) {
    %c0_i32 = arith.constant 0 : i32
    %c0_i32_0 = arith.constant 0 : i32
    return %arg1, %arg0, %c0_i32 : i32, i32, i32
  }
  func.func @transform_13(%arg0: i32, %arg1: i32) -> (i32, i32) {
    %c0_i32 = arith.constant 0 : i32
    %c0_i32_0 = arith.constant 0 : i32
    return %arg0, %c0_i32 : i32, i32
  }
}

module attributes {stable_mosaic.version = 11 : i64} {
  func.func @kernel(%arg0: i32, %arg1: i32, %arg2: memref<4x8x32xf32, #tpu.memory_space<vmem>>, %arg3: memref<4x8x4xf32, #tpu.memory_space<vmem>>, %arg4: memref<8x32xf32, #tpu.memory_space<vmem>>, %arg5: memref<32x96xf32, #tpu.memory_space<vmem>>, %arg6: memref<4x96xf32, #tpu.memory_space<vmem>>, %arg7: memref<32x96xf32, #tpu.memory_space<vmem>>, %arg8: memref<1x96xf32, #tpu.memory_space<vmem>>, %arg9: memref<1x32xf32, #tpu.memory_space<vmem>>, %arg10: memref<32x256xf32, #tpu.memory_space<vmem>>, %arg11: memref<1x256xf32, #tpu.memory_space<vmem>>, %arg12: memref<128x128xf32, #tpu.memory_space<vmem>>, %arg13: memref<1x128xf32, #tpu.memory_space<vmem>>, %arg14: memref<4x8x256xf32, #tpu.memory_space<vmem>>, %arg15: memref<8x32xf32, #tpu.memory_space<vmem>>, %arg16: memref<32x96xf32, #tpu.memory_space<vmem>>, %arg17: memref<32x32xf32, #tpu.memory_space<vmem>>) attributes {dimension_semantics = [#tpu.dimension_semantics<parallel>, #tpu.dimension_semantics<arbitrary>], iteration_bounds = array<i64: 1, 4>, scalar_prefetch = 0 : i64, scratch_operands = 2 : i64, tpu.core_type = #tpu.core_type<tc>, window_params = [{transform_indices = @transform_0, window_bounds = array<i64: 4, 8, 32>}, {transform_indices = @transform_1, window_bounds = array<i64: 4, 8, 4>}, {transform_indices = @transform_2, window_bounds = array<i64: 8, 32>}, {pipeline_mode = #tpu.pipeline_mode<synchronous>, transform_indices = @transform_3, window_bounds = array<i64: 32, 96>}, {pipeline_mode = #tpu.pipeline_mode<synchronous>, transform_indices = @transform_4, window_bounds = array<i64: 4, 96>}, {pipeline_mode = #tpu.pipeline_mode<synchronous>, transform_indices = @transform_5, window_bounds = array<i64: 32, 96>}, {pipeline_mode = #tpu.pipeline_mode<synchronous>, transform_indices = @transform_6, window_bounds = array<i64: 1, 96>}, {pipeline_mode = #tpu.pipeline_mode<synchronous>, transform_indices = @transform_7, window_bounds = array<i64: 1, 32>}, {pipeline_mode = #tpu.pipeline_mode<synchronous>, transform_indices = @transform_8, window_bounds = array<i64: 32, 256>}, {pipeline_mode = #tpu.pipeline_mode<synchronous>, transform_indices = @transform_9, window_bounds = array<i64: 1, 256>}, {pipeline_mode = #tpu.pipeline_mode<synchronous>, transform_indices = @transform_10, window_bounds = array<i64: 128, 128>}, {pipeline_mode = #tpu.pipeline_mode<synchronous>, transform_indices = @transform_11, window_bounds = array<i64: 1, 128>}, {transform_indices = @transform_12, window_bounds = array<i64: 4, 8, 256>}, {transform_indices = @transform_13, window_bounds = array<i64: 8, 32>}]} {
    %c0_i32 = arith.constant 0 : i32
    %0 = arith.cmpi eq, %arg1, %c0_i32 : i32
    %1 = arith.extui %0 : i1 to i32
    %c0_i32_0 = arith.constant 0 : i32
    %2 = arith.cmpi ne, %1, %c0_i32_0 : i32
    scf.if %2 {
      %c0_64 = arith.constant 0 : index
      %c0_65 = arith.constant 0 : index
      %157 = vector.load %arg4[%c0_64, %c0_65] : memref<8x32xf32, #tpu.memory_space<vmem>>, vector<8x32xf32>
      %c0_66 = arith.constant 0 : index
      %c0_67 = arith.constant 0 : index
      %158 = vector.load %arg15[%c0_66, %c0_67] : memref<8x32xf32, #tpu.memory_space<vmem>>, vector<8x32xf32>
      tpu.vector_store %arg15[%c0_66, %c0_67], %157 {strides = array<i32>} : memref<8x32xf32, #tpu.memory_space<vmem>>, vector<8x32xf32>,
    } else {
    }
    %c0 = arith.constant 0 : index
    %c0_1 = arith.constant 0 : index
    %c0_2 = arith.constant 0 : index
    %3 = vector.load %arg2[%c0, %c0_1, %c0_2] : memref<4x8x32xf32, #tpu.memory_space<vmem>>, vector<4x8x32xf32>
    %4 = vector.shape_cast %3 : vector<4x8x32xf32> to vector<32x32xf32>
    %c0_3 = arith.constant 0 : index
    %c0_4 = arith.constant 0 : index
    %5 = vector.load %arg5[%c0_3, %c0_4] : memref<32x96xf32, #tpu.memory_space<vmem>>, vector<32x96xf32>
    %cst = arith.constant dense<0.000000e+00> : vector<32x96xf32>
    %6 = tpu.matmul %4, %5, %cst {dimension_numbers = #tpu.dot_dimension_numbers<[1], [0], [0], [1], [0, 0, 1, 1], [], []>} : vector<32x32xf32>, vector<32x96xf32>, vector<32x96xf32> -> vector<32x96xf32>
    %c0_5 = arith.constant 0 : index
    %c0_6 = arith.constant 0 : index
    %7 = vector.load %arg8[%c0_5, %c0_6] : memref<1x96xf32, #tpu.memory_space<vmem>>, vector<1x96xf32>
    %8 = vector.broadcast %7 : vector<1x96xf32> to vector<32x96xf32>
    %9 = arith.addf %6, %8 : vector<32x96xf32>
    %c0_7 = arith.constant 0 : index
    %c0_8 = arith.constant 0 : index
    %c0_9 = arith.constant 0 : index
    %10 = vector.load %arg3[%c0_7, %c0_8, %c0_9] : memref<4x8x4xf32, #tpu.memory_space<vmem>>, vector<4x8x4xf32>
    %11 = vector.shape_cast %10 : vector<4x8x4xf32> to vector<32x4xf32>
    %c0_10 = arith.constant 0 : index
    %c0_11 = arith.constant 0 : index
    %12 = vector.load %arg6[%c0_10, %c0_11] : memref<4x96xf32, #tpu.memory_space<vmem>>, vector<4x96xf32>
    %cst_12 = arith.constant dense<0.000000e+00> : vector<32x96xf32>
    %13 = tpu.matmul %11, %12, %cst_12 {dimension_numbers = #tpu.dot_dimension_numbers<[1], [0], [0], [1], [0, 0, 1, 1], [], []>} : vector<32x4xf32>, vector<4x96xf32>, vector<32x96xf32> -> vector<32x96xf32>
    %14 = arith.addf %9, %13 : vector<32x96xf32>
    %c0_13 = arith.constant 0 : index
    %c0_14 = arith.constant 0 : index
    %15 = vector.load %arg16[%c0_13, %c0_14] : memref<32x96xf32, #tpu.memory_space<vmem>>, vector<32x96xf32>
    tpu.vector_store %arg16[%c0_13, %c0_14], %14 {strides = array<i32>} : memref<32x96xf32, #tpu.memory_space<vmem>>, vector<32x96xf32>,
    %c0_15 = arith.constant 0 : index
    %c0_16 = arith.constant 0 : index
    %16 = vector.load %arg7[%c0_15, %c0_16] : memref<32x96xf32, #tpu.memory_space<vmem>>, vector<32x96xf32>
    %c0_17 = arith.constant 0 : index
    %c0_18 = arith.constant 0 : index
    %17 = vector.load %arg9[%c0_17, %c0_18] : memref<1x32xf32, #tpu.memory_space<vmem>>, vector<1x32xf32>
    %18 = vector.shape_cast %17 : vector<1x32xf32> to vector<1x32xf32>
    %19 = vector.broadcast %18 : vector<1x32xf32> to vector<8x32xf32>
    %c0_19 = arith.constant 0 : index
    %c0_20 = arith.constant 0 : index
    %20 = vector.load %arg15[%c0_19, %c0_20] : memref<8x32xf32, #tpu.memory_space<vmem>>, vector<8x32xf32>
    %c0_i32_21 = arith.constant 0 : i32
    %c8_i32 = arith.constant 8 : i32
    %21 = arith.muli %c0_i32_21, %c8_i32 : i32
    %22 = tpu.assume_multiple %21, 8 : i32
    %23 = arith.index_cast %22 : i32 to index
    %c0_22 = arith.constant 0 : index
    %24 = vector.load %arg16[%23, %c0_22] : memref<32x96xf32, #tpu.memory_space<vmem>>, vector<8x96xf32>
    %cst_23 = arith.constant dense<0.000000e+00> : vector<8x96xf32>
    %25 = tpu.matmul %20, %16, %cst_23 {dimension_numbers = #tpu.dot_dimension_numbers<[1], [0], [0], [1], [0, 0, 1, 1], [], []>} : vector<8x32xf32>, vector<32x96xf32>, vector<8x96xf32> -> vector<8x96xf32>
    %26 = vector.extract_strided_slice %24 {offsets = [0, 0], sizes = [8, 64], strides = [1, 1]} : vector<8x96xf32> to vector<8x64xf32>
    %27 = vector.extract_strided_slice %25 {offsets = [0, 0], sizes = [8, 64], strides = [1, 1]} : vector<8x96xf32> to vector<8x64xf32>
    %28 = arith.addf %26, %27 : vector<8x64xf32>
    %29 = arith.negf %28 : vector<8x64xf32>
    %30 = math.exp %29 : vector<8x64xf32>
    %cst_24 = arith.constant 1.000000e+00 : f32
    %31 = vector.broadcast %cst_24 : f32 to vector<8x64xf32>
    %32 = arith.addf %31, %30 : vector<8x64xf32>
    %33 = arith.divf %31, %32 : vector<8x64xf32>
    %34 = vector.extract_strided_slice %33 {offsets = [0, 0], sizes = [8, 32], strides = [1, 1]} : vector<8x64xf32> to vector<8x32xf32>
    %35 = vector.extract_strided_slice %33 {offsets = [0, 32], sizes = [8, 32], strides = [1, 1]} : vector<8x64xf32> to vector<8x32xf32>
    %36 = vector.extract_strided_slice %24 {offsets = [0, 64], sizes = [8, 32], strides = [1, 1]} : vector<8x96xf32> to vector<8x32xf32>
    %37 = vector.extract_strided_slice %25 {offsets = [0, 64], sizes = [8, 32], strides = [1, 1]} : vector<8x96xf32> to vector<8x32xf32>
    %38 = arith.addf %37, %19 : vector<8x32xf32>
    %39 = arith.mulf %34, %38 : vector<8x32xf32>
    %40 = arith.addf %36, %39 : vector<8x32xf32>
    %41 = math.tanh %40 : vector<8x32xf32>
    %cst_25 = arith.constant 1.000000e+00 : f32
    %42 = vector.broadcast %cst_25 : f32 to vector<8x32xf32>
    %43 = arith.subf %42, %35 : vector<8x32xf32>
    %44 = arith.mulf %43, %41 : vector<8x32xf32>
    %45 = arith.mulf %35, %20 : vector<8x32xf32>
    %46 = arith.addf %44, %45 : vector<8x32xf32>
    %47 = arith.index_cast %22 : i32 to index
    %c0_26 = arith.constant 0 : index
    %48 = vector.load %arg17[%47, %c0_26] : memref<32x32xf32, #tpu.memory_space<vmem>>, vector<8x32xf32>
    tpu.vector_store %arg17[%47, %c0_26], %46 {strides = array<i32>} : memref<32x32xf32, #tpu.memory_space<vmem>>, vector<8x32xf32>,
    %c1_i32 = arith.constant 1 : i32
    %c8_i32_27 = arith.constant 8 : i32
    %49 = arith.muli %c1_i32, %c8_i32_27 : i32
    %50 = tpu.assume_multiple %49, 8 : i32
    %51 = arith.index_cast %50 : i32 to index
    %c0_28 = arith.constant 0 : index
    %52 = vector.load %arg16[%51, %c0_28] : memref<32x96xf32, #tpu.memory_space<vmem>>, vector<8x96xf32>
    %cst_29 = arith.constant dense<0.000000e+00> : vector<8x96xf32>
    %53 = tpu.matmul %46, %16, %cst_29 {dimension_numbers = #tpu.dot_dimension_numbers<[1], [0], [0], [1], [0, 0, 1, 1], [], []>} : vector<8x32xf32>, vector<32x96xf32>, vector<8x96xf32> -> vector<8x96xf32>
    %54 = vector.extract_strided_slice %52 {offsets = [0, 0], sizes = [8, 64], strides = [1, 1]} : vector<8x96xf32> to vector<8x64xf32>
    %55 = vector.extract_strided_slice %53 {offsets = [0, 0], sizes = [8, 64], strides = [1, 1]} : vector<8x96xf32> to vector<8x64xf32>
    %56 = arith.addf %54, %55 : vector<8x64xf32>
    %57 = arith.negf %56 : vector<8x64xf32>
    %58 = math.exp %57 : vector<8x64xf32>
    %cst_30 = arith.constant 1.000000e+00 : f32
    %59 = vector.broadcast %cst_30 : f32 to vector<8x64xf32>
    %60 = arith.addf %59, %58 : vector<8x64xf32>
    %61 = arith.divf %59, %60 : vector<8x64xf32>
    %62 = vector.extract_strided_slice %61 {offsets = [0, 0], sizes = [8, 32], strides = [1, 1]} : vector<8x64xf32> to vector<8x32xf32>
    %63 = vector.extract_strided_slice %61 {offsets = [0, 32], sizes = [8, 32], strides = [1, 1]} : vector<8x64xf32> to vector<8x32xf32>
    %64 = vector.extract_strided_slice %52 {offsets = [0, 64], sizes = [8, 32], strides = [1, 1]} : vector<8x96xf32> to vector<8x32xf32>
    %65 = vector.extract_strided_slice %53 {offsets = [0, 64], sizes = [8, 32], strides = [1, 1]} : vector<8x96xf32> to vector<8x32xf32>
    %66 = arith.addf %65, %19 : vector<8x32xf32>
    %67 = arith.mulf %62, %66 : vector<8x32xf32>
    %68 = arith.addf %64, %67 : vector<8x32xf32>
    %69 = math.tanh %68 : vector<8x32xf32>
    %cst_31 = arith.constant 1.000000e+00 : f32
    %70 = vector.broadcast %cst_31 : f32 to vector<8x32xf32>
    %71 = arith.subf %70, %63 : vector<8x32xf32>
    %72 = arith.mulf %71, %69 : vector<8x32xf32>
    %73 = arith.mulf %63, %46 : vector<8x32xf32>
    %74 = arith.addf %72, %73 : vector<8x32xf32>
    %75 = arith.index_cast %50 : i32 to index
    %c0_32 = arith.constant 0 : index
    %76 = vector.load %arg17[%75, %c0_32] : memref<32x32xf32, #tpu.memory_space<vmem>>, vector<8x32xf32>
    tpu.vector_store %arg17[%75, %c0_32], %74 {strides = array<i32>} : memref<32x32xf32, #tpu.memory_space<vmem>>, vector<8x32xf32>,
    %c2_i32 = arith.constant 2 : i32
    %c8_i32_33 = arith.constant 8 : i32
    %77 = arith.muli %c2_i32, %c8_i32_33 : i32
    %78 = tpu.assume_multiple %77, 8 : i32
    %79 = arith.index_cast %78 : i32 to index
    %c0_34 = arith.constant 0 : index
    %80 = vector.load %arg16[%79, %c0_34] : memref<32x96xf32, #tpu.memory_space<vmem>>, vector<8x96xf32>
    %cst_35 = arith.constant dense<0.000000e+00> : vector<8x96xf32>
    %81 = tpu.matmul %74, %16, %cst_35 {dimension_numbers = #tpu.dot_dimension_numbers<[1], [0], [0], [1], [0, 0, 1, 1], [], []>} : vector<8x32xf32>, vector<32x96xf32>, vector<8x96xf32> -> vector<8x96xf32>
    %82 = vector.extract_strided_slice %80 {offsets = [0, 0], sizes = [8, 64], strides = [1, 1]} : vector<8x96xf32> to vector<8x64xf32>
    %83 = vector.extract_strided_slice %81 {offsets = [0, 0], sizes = [8, 64], strides = [1, 1]} : vector<8x96xf32> to vector<8x64xf32>
    %84 = arith.addf %82, %83 : vector<8x64xf32>
    %85 = arith.negf %84 : vector<8x64xf32>
    %86 = math.exp %85 : vector<8x64xf32>
    %cst_36 = arith.constant 1.000000e+00 : f32
    %87 = vector.broadcast %cst_36 : f32 to vector<8x64xf32>
    %88 = arith.addf %87, %86 : vector<8x64xf32>
    %89 = arith.divf %87, %88 : vector<8x64xf32>
    %90 = vector.extract_strided_slice %89 {offsets = [0, 0], sizes = [8, 32], strides = [1, 1]} : vector<8x64xf32> to vector<8x32xf32>
    %91 = vector.extract_strided_slice %89 {offsets = [0, 32], sizes = [8, 32], strides = [1, 1]} : vector<8x64xf32> to vector<8x32xf32>
    %92 = vector.extract_strided_slice %80 {offsets = [0, 64], sizes = [8, 32], strides = [1, 1]} : vector<8x96xf32> to vector<8x32xf32>
    %93 = vector.extract_strided_slice %81 {offsets = [0, 64], sizes = [8, 32], strides = [1, 1]} : vector<8x96xf32> to vector<8x32xf32>
    %94 = arith.addf %93, %19 : vector<8x32xf32>
    %95 = arith.mulf %90, %94 : vector<8x32xf32>
    %96 = arith.addf %92, %95 : vector<8x32xf32>
    %97 = math.tanh %96 : vector<8x32xf32>
    %cst_37 = arith.constant 1.000000e+00 : f32
    %98 = vector.broadcast %cst_37 : f32 to vector<8x32xf32>
    %99 = arith.subf %98, %91 : vector<8x32xf32>
    %100 = arith.mulf %99, %97 : vector<8x32xf32>
    %101 = arith.mulf %91, %74 : vector<8x32xf32>
    %102 = arith.addf %100, %101 : vector<8x32xf32>
    %103 = arith.index_cast %78 : i32 to index
    %c0_38 = arith.constant 0 : index
    %104 = vector.load %arg17[%103, %c0_38] : memref<32x32xf32, #tpu.memory_space<vmem>>, vector<8x32xf32>
    tpu.vector_store %arg17[%103, %c0_38], %102 {strides = array<i32>} : memref<32x32xf32, #tpu.memory_space<vmem>>, vector<8x32xf32>,
    %c3_i32 = arith.constant 3 : i32
    %c8_i32_39 = arith.constant 8 : i32
    %105 = arith.muli %c3_i32, %c8_i32_39 : i32
    %106 = tpu.assume_multiple %105, 8 : i32
    %107 = arith.index_cast %106 : i32 to index
    %c0_40 = arith.constant 0 : index
    %108 = vector.load %arg16[%107, %c0_40] : memref<32x96xf32, #tpu.memory_space<vmem>>, vector<8x96xf32>
    %cst_41 = arith.constant dense<0.000000e+00> : vector<8x96xf32>
    %109 = tpu.matmul %102, %16, %cst_41 {dimension_numbers = #tpu.dot_dimension_numbers<[1], [0], [0], [1], [0, 0, 1, 1], [], []>} : vector<8x32xf32>, vector<32x96xf32>, vector<8x96xf32> -> vector<8x96xf32>
    %110 = vector.extract_strided_slice %108 {offsets = [0, 0], sizes = [8, 64], strides = [1, 1]} : vector<8x96xf32> to vector<8x64xf32>
    %111 = vector.extract_strided_slice %109 {offsets = [0, 0], sizes = [8, 64], strides = [1, 1]} : vector<8x96xf32> to vector<8x64xf32>
    %112 = arith.addf %110, %111 : vector<8x64xf32>
    %113 = arith.negf %112 : vector<8x64xf32>
    %114 = math.exp %113 : vector<8x64xf32>
    %cst_42 = arith.constant 1.000000e+00 : f32
    %115 = vector.broadcast %cst_42 : f32 to vector<8x64xf32>
    %116 = arith.addf %115, %114 : vector<8x64xf32>
    %117 = arith.divf %115, %116 : vector<8x64xf32>
    %118 = vector.extract_strided_slice %117 {offsets = [0, 0], sizes = [8, 32], strides = [1, 1]} : vector<8x64xf32> to vector<8x32xf32>
    %119 = vector.extract_strided_slice %117 {offsets = [0, 32], sizes = [8, 32], strides = [1, 1]} : vector<8x64xf32> to vector<8x32xf32>
    %120 = vector.extract_strided_slice %108 {offsets = [0, 64], sizes = [8, 32], strides = [1, 1]} : vector<8x96xf32> to vector<8x32xf32>
    %121 = vector.extract_strided_slice %109 {offsets = [0, 64], sizes = [8, 32], strides = [1, 1]} : vector<8x96xf32> to vector<8x32xf32>
    %122 = arith.addf %121, %19 : vector<8x32xf32>
    %123 = arith.mulf %118, %122 : vector<8x32xf32>
    %124 = arith.addf %120, %123 : vector<8x32xf32>
    %125 = math.tanh %124 : vector<8x32xf32>
    %cst_43 = arith.constant 1.000000e+00 : f32
    %126 = vector.broadcast %cst_43 : f32 to vector<8x32xf32>
    %127 = arith.subf %126, %119 : vector<8x32xf32>
    %128 = arith.mulf %127, %125 : vector<8x32xf32>
    %129 = arith.mulf %119, %102 : vector<8x32xf32>
    %130 = arith.addf %128, %129 : vector<8x32xf32>
    %131 = arith.index_cast %106 : i32 to index
    %c0_44 = arith.constant 0 : index
    %132 = vector.load %arg17[%131, %c0_44] : memref<32x32xf32, #tpu.memory_space<vmem>>, vector<8x32xf32>
    tpu.vector_store %arg17[%131, %c0_44], %130 {strides = array<i32>} : memref<32x32xf32, #tpu.memory_space<vmem>>, vector<8x32xf32>,
    %c4_i32 = arith.constant 4 : i32
    %c0_45 = arith.constant 0 : index
    %c0_46 = arith.constant 0 : index
    %133 = vector.load %arg15[%c0_45, %c0_46] : memref<8x32xf32, #tpu.memory_space<vmem>>, vector<8x32xf32>
    tpu.vector_store %arg15[%c0_45, %c0_46], %130 {strides = array<i32>} : memref<8x32xf32, #tpu.memory_space<vmem>>, vector<8x32xf32>,
    %c0_47 = arith.constant 0 : index
    %c0_48 = arith.constant 0 : index
    %134 = vector.load %arg17[%c0_47, %c0_48] : memref<32x32xf32, #tpu.memory_space<vmem>>, vector<32x32xf32>
    %c0_49 = arith.constant 0 : index
    %c0_50 = arith.constant 0 : index
    %135 = vector.load %arg10[%c0_49, %c0_50] : memref<32x256xf32, #tpu.memory_space<vmem>>, vector<32x256xf32>
    %cst_51 = arith.constant dense<0.000000e+00> : vector<32x256xf32>
    %136 = tpu.matmul %134, %135, %cst_51 {dimension_numbers = #tpu.dot_dimension_numbers<[1], [0], [0], [1], [0, 0, 1, 1], [], []>} : vector<32x32xf32>, vector<32x256xf32>, vector<32x256xf32> -> vector<32x256xf32>
    %c0_52 = arith.constant 0 : index
    %c0_53 = arith.constant 0 : index
    %137 = vector.load %arg11[%c0_52, %c0_53] : memref<1x256xf32, #tpu.memory_space<vmem>>, vector<1x256xf32>
    %138 = vector.broadcast %137 : vector<1x256xf32> to vector<32x256xf32>
    %139 = arith.addf %136, %138 : vector<32x256xf32>
    %140 = vector.extract_strided_slice %139 {offsets = [0, 0], sizes = [32, 128], strides = [1, 1]} : vector<32x256xf32> to vector<32x128xf32>
    %141 = vector.extract_strided_slice %139 {offsets = [0, 128], sizes = [32, 128], strides = [1, 1]} : vector<32x256xf32> to vector<32x128xf32>
    %cst_54 = arith.constant 0.000000e+00 : f32
    %142 = vector.broadcast %cst_54 : f32 to vector<32x128xf32>
    %143 = arith.maximumf %141, %142 : vector<32x128xf32>
    %c0_55 = arith.constant 0 : index
    %c0_56 = arith.constant 0 : index
    %144 = vector.load %arg12[%c0_55, %c0_56] : memref<128x128xf32, #tpu.memory_space<vmem>>, vector<128x128xf32>
    %cst_57 = arith.constant dense<0.000000e+00> : vector<32x128xf32>
    %145 = tpu.matmul %143, %144, %cst_57 {dimension_numbers = #tpu.dot_dimension_numbers<[1], [0], [0], [1], [0, 0, 1, 1], [], []>} : vector<32x128xf32>, vector<128x128xf32>, vector<32x128xf32> -> vector<32x128xf32>
    %c0_58 = arith.constant 0 : index
    %c0_59 = arith.constant 0 : index
    %146 = vector.load %arg13[%c0_58, %c0_59] : memref<1x128xf32, #tpu.memory_space<vmem>>, vector<1x128xf32>
    %147 = vector.broadcast %146 : vector<1x128xf32> to vector<32x128xf32>
    %148 = arith.addf %145, %147 : vector<32x128xf32>
    %149 = arith.negf %148 : vector<32x128xf32>
    %150 = math.exp %149 : vector<32x128xf32>
    %cst_60 = arith.constant 1.000000e+00 : f32
    %151 = vector.broadcast %cst_60 : f32 to vector<32x128xf32>
    %152 = arith.addf %151, %150 : vector<32x128xf32>
    %153 = arith.divf %151, %152 : vector<32x128xf32>
    %154 = tpu.concatenate %140, %153 in 1 : vector<32x128xf32>, vector<32x128xf32> -> vector<32x256xf32>
    %155 = vector.shape_cast %154 : vector<32x256xf32> to vector<4x8x256xf32>
    %c0_61 = arith.constant 0 : index
    %c0_62 = arith.constant 0 : index
    %c0_63 = arith.constant 0 : index
    %156 = vector.load %arg14[%c0_61, %c0_62, %c0_63] : memref<4x8x256xf32, #tpu.memory_space<vmem>>, vector<4x8x256xf32>
    tpu.vector_store %arg14[%c0_61, %c0_62, %c0_63], %155 {strides = array<i32>} : memref<4x8x256xf32, #tpu.memory_space<vmem>>, vector<4x8x256xf32>,
    return
  }
  func.func @transform_0(%arg0: i32, %arg1: i32) -> (i32, i32, i32) {
    %c0_i32 = arith.constant 0 : i32
    %c0_i32_0 = arith.constant 0 : i32
    return %arg1, %arg0, %c0_i32 : i32, i32, i32
  }
  func.func @transform_1(%arg0: i32, %arg1: i32) -> (i32, i32, i32) {
    %c0_i32 = arith.constant 0 : i32
    %c0_i32_0 = arith.constant 0 : i32
    return %arg1, %arg0, %c0_i32 : i32, i32, i32
  }
  func.func @transform_2(%arg0: i32, %arg1: i32) -> (i32, i32) {
    %c0_i32 = arith.constant 0 : i32
    %c0_i32_0 = arith.constant 0 : i32
    return %arg0, %c0_i32 : i32, i32
  }
  func.func @transform_3(%arg0: i32, %arg1: i32) -> (i32, i32) {
    %c0_i32 = arith.constant 0 : i32
    %c0_i32_0 = arith.constant 0 : i32
    %c0_i32_1 = arith.constant 0 : i32
    return %c0_i32, %c0_i32_0 : i32, i32
  }
  func.func @transform_4(%arg0: i32, %arg1: i32) -> (i32, i32) {
    %c0_i32 = arith.constant 0 : i32
    %c0_i32_0 = arith.constant 0 : i32
    %c0_i32_1 = arith.constant 0 : i32
    return %c0_i32, %c0_i32_0 : i32, i32
  }
  func.func @transform_5(%arg0: i32, %arg1: i32) -> (i32, i32) {
    %c0_i32 = arith.constant 0 : i32
    %c0_i32_0 = arith.constant 0 : i32
    %c0_i32_1 = arith.constant 0 : i32
    return %c0_i32, %c0_i32_0 : i32, i32
  }
  func.func @transform_6(%arg0: i32, %arg1: i32) -> (i32, i32) {
    %c0_i32 = arith.constant 0 : i32
    %c0_i32_0 = arith.constant 0 : i32
    %c0_i32_1 = arith.constant 0 : i32
    return %c0_i32, %c0_i32_0 : i32, i32
  }
  func.func @transform_7(%arg0: i32, %arg1: i32) -> (i32, i32) {
    %c0_i32 = arith.constant 0 : i32
    %c0_i32_0 = arith.constant 0 : i32
    %c0_i32_1 = arith.constant 0 : i32
    return %c0_i32, %c0_i32_0 : i32, i32
  }
  func.func @transform_8(%arg0: i32, %arg1: i32) -> (i32, i32) {
    %c0_i32 = arith.constant 0 : i32
    %c0_i32_0 = arith.constant 0 : i32
    %c0_i32_1 = arith.constant 0 : i32
    return %c0_i32, %c0_i32_0 : i32, i32
  }
  func.func @transform_9(%arg0: i32, %arg1: i32) -> (i32, i32) {
    %c0_i32 = arith.constant 0 : i32
    %c0_i32_0 = arith.constant 0 : i32
    %c0_i32_1 = arith.constant 0 : i32
    return %c0_i32, %c0_i32_0 : i32, i32
  }
  func.func @transform_10(%arg0: i32, %arg1: i32) -> (i32, i32) {
    %c0_i32 = arith.constant 0 : i32
    %c0_i32_0 = arith.constant 0 : i32
    %c0_i32_1 = arith.constant 0 : i32
    return %c0_i32, %c0_i32_0 : i32, i32
  }
  func.func @transform_11(%arg0: i32, %arg1: i32) -> (i32, i32) {
    %c0_i32 = arith.constant 0 : i32
    %c0_i32_0 = arith.constant 0 : i32
    %c0_i32_1 = arith.constant 0 : i32
    return %c0_i32, %c0_i32_0 : i32, i32
  }
  func.func @transform_12(%arg0: i32, %arg1: i32) -> (i32, i32, i32) {
    %c0_i32 = arith.constant 0 : i32
    %c0_i32_0 = arith.constant 0 : i32
    return %arg1, %arg0, %c0_i32 : i32, i32, i32
  }
  func.func @transform_13(%arg0: i32, %arg1: i32) -> (i32, i32) {
    %c0_i32 = arith.constant 0 : i32
    %c0_i32_0 = arith.constant 0 : i32
    return %arg0, %c0_i32 : i32, i32
  }
}

</mosaic_0001>

<bundles_post_ra>
// kernel: tpu_custom_call.1
= control target key start
LH: loop header
LB: loop body
LE: loop exit
PB: predicated region body
PF: predicated region fallthrough
CT: control target
= control target key end

     0   :  { %s2881_s0 = inlined_call_operand.vmem [shape: f32[16,8,32], index: 0, kind: input, shape index: {}]   ;;  %s2882_s1 = inlined_call_operand.vmem [shape: f32[16,8,4], index: 1, kind: input, shape index: {}]   ;;  %s2883_s2 = inlined_call_operand.hbm [shape: f32[8,32], index: 2, kind: input, shape index: {}]   ;;  %s2884_s3 = inlined_call_operand.vmem [shape: f32[32,96], index: 3, kind: input, shape index: {}]   ;;  %s2885_s4 = inlined_call_operand.vmem [shape: f32[4,96], index: 4, kind: input, shape index: {}]   ;;  %s2886_s5 = inlined_call_operand.hbm [shape: f32[32,96], index: 5, kind: input, shape index: {}]   ;;  %s2887_s6 = inlined_call_operand.vmem [shape: f32[1,96], index: 6, kind: input, shape index: {}]   ;;  %s2888_s7 = inlined_call_operand.vmem [shape: f32[1,32], index: 7, kind: input, shape index: {}]   ;;  %s2889_s8 = inlined_call_operand.hbm [shape: f32[32,256], index: 8, kind: input, shape index: {}]   ;;  %s2890_s9 = inlined_call_operand.vmem [shape: f32[1,256], index: 9, kind: input, shape index: {}]   ;;  %s2891_s10 = inlined_call_operand.hbm [shape: f32[128,128], index: 10, kind: input, shape index: {}]   ;;  %s2892_s11 = inlined_call_operand.vmem [shape: f32[1,128], index: 11, kind: input, shape index: {}]   ;;  %s2893_s12 = inlined_call_operand.hbm [shape: f32[16,8,256], index: 12, kind: output, shape index: {0}]   ;;  %s2894_s13 = inlined_call_operand.hbm [shape: f32[8,32], index: 13, kind: output, shape index: {1}]  }
   0x1   :  { %2916 = sst [smem:[#allocation29_spill]] %s2883_s2 }
   0x2   :  { %2917 = sst [smem:[#allocation30_spill]] %s2893_s12 }
   0x3   :  { %2918 = sst [smem:[#allocation31_spill]] %s2894_s13 }
   0x4   :  { %19 = vsyncpa [#allocation5], 0 }
   0x5   :  { %20 = vsyncpa [#allocation8], 0 }
   0x6   :  { %21 = vsyncpa [#allocation11], 0 }
   0x7   :  { %22 = vsyncpa [#allocation6], 0 }
   0x8   :  { %24 = vsyncpa [#allocation6 + $0x1], 0 }
   0x9   :  { %25 = vsyncpa [#allocation14], 0  ;;  %s2466_s25 = smov 0   ;;  %s2468_s26 = smov 0  }
   0xa   :  { %s2470_s27 = smov 0   ;;  %s2472_s28 = smov 0  }
   0xb   :  { %s2474_s29 = smov 0   ;;  %s2476_s30 = smov 0  }
   0xc LB: > { %2919 = sst [smem:[#allocation20_spill]] %s2356_s25  ;;  %s1695_s14 = sadd.s32 4294967295, %s2376_s30   ;;  %s2376_s30 = sphi %s2476_s30, %s31_s30   ;;  %s2372_s29 = sphi %s2474_s29, %s2954_s29   ;;  %s2368_s28 = sphi %s2472_s28, %s2953_s28   ;;  %s2364_s27 = sphi %s2470_s27, %s2952_s27   ;;  %s2360_s26 = sphi %s2468_s26, %s2956_s26   ;;  %s2356_s25 = sphi %s2466_s25, %s2955_s25  }
   0xd   : > { %2920 = sst [smem:[#allocation21_spill]] %s2364_s27  ;;  %s1696_s15 = sadd.s32 4294967294, %s2376_s30  }
   0xe   : > { %2921 = sst [smem:[#allocation22_spill]] %s2372_s29  ;;  %s40_s16 = sadd.s32 1, %s2372_s29 }
   0xf   : > { %2922 = sst [smem:[#allocation23_spill]] %s2376_s30  ;;  %s323_s17 = sadd.s32 1, %s2364_s27 }
  0x10   : > { %p41_p0 = scmp.ge.s32.totalorder %s40_s16, 4  ;;  %p333_p1 = scmp.ne.s32.totalorder %s2364_s27, %s2360_s26 }
  0x11   : > { %p2502_p2 = scmp.eq.s32.totalorder %s1695_s14, 3  ;;  %p339_p3 = scmp.ne.s32.totalorder %s2360_s26, %s2356_s25 }
  0x12   : > { %s2958_s16 = smov (%p41_p0, %s40_s16), 0  ;;  %p340_p5 = scmp.eq.s32.totalorder %s1696_s15, 3 }
  0x13   : > { %s2923_s18 = scalar_select %p2502_p2, 1, 0 }
  0x14   : > { %2925 = sst [smem:[#allocation25_spill]] %s2958_s16  ;;  %p2512_p4 = por %p2502_p2, %p333_p1 }
  0x15   : > { %2924 = sst [smem:[#allocation24_spill]] %s2923_s18  ;;  %s318_s20 = ssub.s32 %s2372_s29, %s2958_s16 }
  0x16   : > { %s2926_s19 = scalar_select %p2512_p4, 1, 0 }
  0x17   : > { %p1697_p6 = scmp.ge.s32.totalorder %s2376_s30, 1  ;;  %p321_p7 = scmp.eq.s32.totalorder %s318_s20, 0 }
  0x18   : > { %2927 = sst [smem:[#allocation26_spill]] %s2926_s19  ;;  %p2519_p8 = por %p340_p5, %p339_p3 }
  0x19   : > { %p373_p9 = scmp.lt.s32.totalorder %s2376_s30, 5  ;;  %p2531_p11 = scmp.eq.s32.totalorder %s1695_s14, 0 }
  0x1a   : > { %s2928_s21 = scalar_select %p2519_p8, 1, 0 }
  0x1b   : > { %s2525_s22 = scalar_select %p321_p7, %s2364_s27, %s323_s17  }
  0x1c   : > { %2929 = sst [smem:[#allocation27_spill]] %s2928_s21  ;;  %p2527_p10 = pnand %p1697_p6, %p373_p9 }
  0x1d   : > { %2930 = sst [smem:[#allocation28_spill]] %s2525_s22  ;;  %s2378_s15 = smov [#allocation7]  }
  0x1e   : > { %s2931_s23 = scalar_select %p2527_p10, 1, 0 }
  0x1f   : > { %s2932_s24 = scalar_select %p2531_p11, 1, 0 }
  0x20   : > { %p2011_p12 = pneg %p2527_p10  ;;  %s404_s20 = sshll.u32 %s2378_s15, 4  ;;  %s405_s20 = int_to_ptr.vmem [resolvable:$true] %s404_s20 }
  0x21   : > { %s2379_s17 = smov [#allocation4]   ;;  %s2144_s14 = scalar_lea.hbm %s2886_s5, 512 }
  0x22   : > { %p2539_p13 = pnand %p2531_p11, %p2011_p12  ;;  %s388_s29 = sshll.u32 %s2379_s17, 4  ;;  %s389_s29 = int_to_ptr.vmem [resolvable:$true] %s388_s29 }
  0x23   : > { %p2145_p0 = scmp.ne.s32.totalorder %s2886_s5, %s2144_s14  ;;  %p2151_p6 = scmp.lt.u32.totalorder %s2144_s14, %s2886_s5 }
  0x24   : > { %p2551_p1 = pneg %p2539_p13 }
  0x26   : > { %p2147_p3 = pnand %p2551_p1, %p2145_p0 }
  0x28   : > { %p2148_p5 = pneg %p2147_p3 }
  0x2a   : > { %p2153_p7 = pnand %p2151_p6, %p2148_p5 }
  0x2c   : > { %2156 = shalt.err (!%p2153_p7)
}
  0x2d   : > { %s2157_s27 = scalar_lea.vmem %s405_s20, 512  ;;  %p2165_p4 = scmp.lt.s32.totalorder %s405_s20, %s405_s20 }
  0x2e   : > { %p2158_p9 = scmp.ne.s32.totalorder %s405_s20, %s2157_s27  ;;  %p2166_p2 = scmp.lt.s32.totalorder %s2157_s27, %s2157_s27 }
  0x30   : > { %p2160_p12 = pnand %p2158_p9, %p2551_p1  ;;  %p2167_p11 = por %p2166_p2, %p2165_p4 }
  0x32   : > { %p2161_p8 = pneg %p2160_p12 }
  0x34   : > { %p2168_p10 = pnand %p2167_p11, %p2161_p8 }
  0x36   : > { %2171 = shalt.err (!%p2168_p10)
}
  0x37   : > { %s2914_s25 = smov 128   ;;  %s2915_s21 = smov 8  }
  0x38   : > { %2017 = dma.hbm_to_vmem [thread:$0]  (!%p2539_p13), %s2886_s5, 512, %s405_s20, [#allocation8], %s2914_s25, %s2914_s25, %s2915_s21  }
  0x39   : > { %s2935_s2 = sld [smem:[#allocation29_spill]] }
  0x3f   : > { %s2172_s14 = scalar_lea.hbm %s2935_s2, 128 }
  0x40   : > { %p2173_p2 = scmp.ne.s32.totalorder %s2935_s2, %s2172_s14  ;;  %p2179_p10 = scmp.lt.u32.totalorder %s2172_s14, %s2935_s2 }
  0x42   : > { %p2175_p4 = pnand %p2173_p2, %p2551_p1 }
  0x44   : > { %p2176_p8 = pneg %p2175_p4 }
  0x46   : > { %p2181_p11 = pnand %p2179_p10, %p2176_p8 }
  0x48   : > { %2184 = shalt.err (!%p2181_p11)
}
  0x49   : > { %s2185_s12 = scalar_lea.vmem %s389_s29, 128  ;;  %p2193_p6 = scmp.lt.s32.totalorder %s389_s29, %s389_s29 }
  0x4a   : > { %p2186_p0 = scmp.ne.s32.totalorder %s389_s29, %s2185_s12  ;;  %p2194_p7 = scmp.lt.s32.totalorder %s2185_s12, %s2185_s12 }
  0x4c   : > { %p2188_p3 = pnand %p2186_p0, %p2551_p1  ;;  %p2195_p9 = por %p2194_p7, %p2193_p6 }
  0x4e   : > { %p2189_p5 = pneg %p2188_p3 }
  0x50   : > { %p2196_p12 = pnand %p2195_p9, %p2189_p5 }
  0x52   : > { %2199 = shalt.err (!%p2196_p12)
}
  0x53   : > { %2014 = dma.hbm_to_vmem [thread:$0]  (!%p2539_p13), %s2935_s2, 128, %s389_s29, [#allocation5]  }
  0x54   : > { %s2382_s13 = smov [#allocation9]   ;;  %s2200_s17 = scalar_lea.hbm %s2889_s8, 1024 }
  0x55   : > { %s423_s18 = sshll.u32 %s2382_s13, 4  ;;  %p2201_p2 = scmp.ne.s32.totalorder %s2889_s8, %s2200_s17  ;;  %s424_s18 = int_to_ptr.vmem [resolvable:$true] %s423_s18 }
  0x56   : > { %p2207_p10 = scmp.lt.u32.totalorder %s2200_s17, %s2889_s8 }
  0x57   : > { %p2203_p4 = pnand %p2201_p2, %p2551_p1 }
  0x59   : > { %p2204_p8 = pneg %p2203_p4 }
  0x5b   : > { %p2209_p11 = pnand %p2207_p10, %p2204_p8 }
  0x5d   : > { %2212 = shalt.err (!%p2209_p11)
}
  0x5e   : > { %s2213_s29 = scalar_lea.vmem %s424_s18, 1024  ;;  %p2221_p6 = scmp.lt.s32.totalorder %s424_s18, %s424_s18 }
  0x5f   : > { %p2214_p0 = scmp.ne.s32.totalorder %s424_s18, %s2213_s29  ;;  %p2222_p7 = scmp.lt.s32.totalorder %s2213_s29, %s2213_s29 }
  0x61   : > { %p2216_p3 = pnand %p2214_p0, %p2551_p1  ;;  %p2223_p9 = por %p2222_p7, %p2221_p6 }
  0x63   : > { %p2217_p5 = pneg %p2216_p3 }
  0x65   : > { %p2224_p12 = pnand %p2223_p9, %p2217_p5 }
  0x67   : > { %2227 = shalt.err (!%p2224_p12)
}
  0x68   : > { %s2383_s19 = smov 256   ;;  %s2384_s20 = smov 16  }
  0x69   : > { %2020 = dma.hbm_to_vmem [thread:$0]  (!%p2539_p13), %s2889_s8, 1024, %s424_s18, [#allocation8], %s2383_s19, %s2383_s19, %s2384_s20  }
  0x6a   : > { %s2385_s30 = smov [#allocation10]   ;;  %s2228_s27 = scalar_lea.hbm %s2891_s10, 2048 }
  0x6b   : > { %s439_s22 = sshll.u32 %s2385_s30, 4  ;;  %p2229_p2 = scmp.ne.s32.totalorder %s2891_s10, %s2228_s27  ;;  %s440_s22 = int_to_ptr.vmem [resolvable:$true] %s439_s22 }
  0x6c   : > { %p2235_p10 = scmp.lt.u32.totalorder %s2228_s27, %s2891_s10 }
  0x6d   : > { %p2231_p4 = pnand %p2229_p2, %p2551_p1 }
  0x6f   : > { %p2232_p8 = pneg %p2231_p4 }
  0x71   : > { %p2237_p11 = pnand %p2235_p10, %p2232_p8 }
  0x73   : > { %2240 = shalt.err (!%p2237_p11)
}
  0x74   : > { %s2241_s18 = scalar_lea.vmem %s440_s22, 2048  ;;  %p2249_p6 = scmp.lt.s32.totalorder %s440_s22, %s440_s22 }
  0x75   : > { %p2242_p0 = scmp.ne.s32.totalorder %s440_s22, %s2241_s18  ;;  %p2250_p7 = scmp.lt.s32.totalorder %s2241_s18, %s2241_s18 }
  0x77   : > { %p2244_p3 = pnand %p2242_p0, %p2551_p1  ;;  %p2251_p9 = por %p2250_p7, %p2249_p6 }
  0x79   : > { %p2245_p5 = pneg %p2244_p3 }
  0x7b   : > { %p2252_p12 = pnand %p2251_p9, %p2245_p5 }
  0x7d   : > { %2255 = shalt.err (!%p2252_p12)
}
  0x7e   : > { %s2936_s19 = smov 8   ;;  %s2937_s20 = smov 128  }
  0x7f   : > { %2023 = dma.hbm_to_vmem [thread:$0]  (!%p2539_p13), %s2891_s10, 2048, %s440_s22, [#allocation11], %s2937_s20, %s2937_s20, %s2936_s19  }
  0x80   : > { %p2938_p2 = scmp.ne.s32.totalorder %s2931_s23, 0 }
  0x81   : > { %p2939_p1 = scmp.ne.s32.totalorder (!%p2938_p2), %s2932_s24, 0 }
  0x82   : > { %482 = sbr.rel (%p2938_p2) target bundleno = 3435 (0xd6b), region = 68 }
  0x89   : > { %2335 = dma.done.wait (%p2939_p1), [#allocation5], 128  }
  0x8a   : > { %2337 = vsyncadd (%p2939_p1), [#allocation5], 4294967168 }
  0x8b   : > { %2339 = dma.done.wait (%p2939_p1), [#allocation8], 1536  }
  0x8c   : > { %2341 = vsyncadd (%p2939_p1), [#allocation8], 4294965760 }
  0x8d   : > { %2343 = dma.done.wait (%p2939_p1), [#allocation11], 2048  }
  0x8e   : > { %2345 = vsyncadd (%p2939_p1), [#allocation11], 4294965248  ;;  %s544_s16 = sand.u32 1, %s2360_s26   ;;  %s1709_s23 = sshll.u32 %s2368_s28, 2 }
  0x8f   : > { %s1708_s15 = sshll.u32 %s544_s16, 6  ;;  %p550_p13 = scmp.lt.s32.totalorder %s1709_s23, 15 }
  0x90   : > { %s2655_s27 = scalar_lea.vmem [#allocation12], %s1708_s15  ;;  %p1713_p4 = scmp.ne.s32.totalorder %s2368_s28, 0 }
  0x91   : > { %s2960_s23 = smov (!%p550_p13, %s1709_s23), 15  ;;  %v572_v0 = vld [vmem:[#allocation4] sm:$0xff] (!%p1713_p4)  ;;  %vm573_vm0 = vcmask (!%p1713_p4), 261120  }
  0x92   : > { %s1710_s25 = sshll.u32 %s2960_s23, 3  ;;  %571 = sbr.rel (%p1713_p4) target bundleno = 153 (0x99), region = 88  ;;  %574 = vst.msk [vmem:[#allocation13] sm:$0xff] (!%p1713_p4), %vm573_vm0, %v572_v0 }
  0x93   : > { %s2648_s22 = scalar_lea.vmem %s2881_s0, %s1710_s25  ;;  %s2653_s24 = scalar_lea.vmem %s2882_s1, %s1710_s25 }
  0x99 PF: > { %v579_v1 = vld [vmem:[%s2884_s3] sm:$0xff]  ;;  %v580_v2 = vld [vmem:[%s2884_s3 + $0x8] sm:$0xff]  ;;  %v581_v3 = vld [vmem:[%s2884_s3 + $0x10] sm:$0xff]  ;;  %vm590_vm1 = vcmask 261120   ;;  %v2386_v8 = vmov 0.0|0.0   ;;  %vm2387_vm2 = vmmov 0  }
  0x9a   : > { %v1909_v4 = vpack.c.bf16 %v580_v2, %v579_v1  ;;  %v582_v5 = vld [vmem:[%s2884_s3 + $0x18] sm:$0xff]  ;;  %v575_v6 = vld [vmem:[%s2648_s22] sm:$0xff]  ;;  %1923 = vmatprep.subr.bf16.mxu1 %v2386_v8  ;;  %v804_v9 = vld [vmem:[#allocation7] sm:$0xff]  ;;  %v2388_v10 = vmov 0.0   ;;  %vm706_vm3 = vcmask 1043456   ;;  %s2389_s17 = smov 64  }
  0x9b   : > { %v1913_v7 = vpack.c.bf16 %v582_v5, %v581_v3  ;;  %1813 = vmatprep.mubr.msk.f32.mxu0 %vm590_vm1, %v575_v6  ;;  %1846 = vmatprep.mubr.msk.f32.mxu1 %vm2387_vm2, %v2388_v10  ;;  %v805_v11 = vld [vmem:[#allocation7 + $0x8] sm:$0xff]  ;;  %v692_v12 = vld [vmem:[%s2885_s4] sm:$0xf]  ;;  %v806_v14 = vld [vmem:[#allocation7 + $0x10] sm:$0xff]  ;;  %vm693_vm4 = vcmask 31744   ;;  %vm799_vm5 = vcmask 785408  }
  0x9c   : > { %1910 = vmatprep.subr.bf16.mxu0 %v1909_v4  ;;  %v2678_v13 = vpack.c.bf16 %v805_v11, %v804_v9  ;;  %v807_v15 = vld [vmem:[#allocation7 + $0x18] sm:$0xff]  ;;  %v576_v17 = vld [vmem:[%s2648_s22 + $0x8] sm:$0xff]  ;;  %v577_v18 = vld [vmem:[%s2648_s22 + $0x10] sm:$0xff]  ;;  %s2391_s12 = smov 96   ;;  %s2940_s2 = sld [smem:[#allocation24_spill]] }
  0x9d   : > { %1912 = vmatpush3.bf16.msra.mxu0 %v1909_v4  ;;  %v1724_v16 = vld [vmem:[%s2888_s7] ss:$0 sm:$0xff]  ;;  %v2688_v19 = vpack.c.bf16 %v807_v15, %v806_v14  ;;  %v578_v20 = vld [vmem:[%s2648_s22 + $0x18] sm:$0xff]  ;;  %v689_v22 = vld [vmem:[%s2653_s24 + $0x8] sm:$0xff]  ;;  %s2392_s21 = smov [#allocation13]  }
  0x9e   : > { %1914 = vmatprep.subr.bf16.mxu0 %v1913_v7  ;;  %896 = vrot.lane.b32.xlu0 %v1724_v16, %s2389_s17  ;;  %v688_v21 = vld [vmem:[%s2653_s24] sm:$0xff]  ;;  %v690_v23 = vld [vmem:[%s2653_s24 + $0x10] sm:$0xff]  ;;  %v691_v24 = vld [vmem:[%s2653_s24 + $0x18] sm:$0xff]  ;;  %s2390_s24 = smov 32   ;;  %s1551_s23 = sshll.u32 %s2392_s21, 4  ;;  %s1552_s23 = int_to_ptr.vmem [resolvable:$true] %s1551_s23 }
  0x9f   : > { %1925 = vmatpush3.bf16.msra.mxu1 %v2678_v13  ;;  %v814_v25 = vld [vmem:[#allocation13] sm:$0xff]  ;;  %v1714_v26 = vld [vmem:[%s2887_s6] ss:$0 sm:$0xff]  ;;  %v1254_v6 = vld [vmem:[#allocation9 + $0x8] sm:$0xff]  ;;  %s2256_s15 = scalar_lea.vmem %s1552_s23, 128  ;;  %p2263_p3 = scmp.lt.s32.totalorder %s1552_s23, %s1552_s23 }
  0xa0   : > { %1926 = vmatprep.subr.bf16.mxu1 %v2386_v8  ;;  %v1253_v16 = vld [vmem:[#allocation9] sm:$0xff]  ;;  %p2257_p8 = scmp.ne.s32.totalorder %s1552_s23, %s2256_s15  ;;  %p2264_p5 = scmp.lt.s32.totalorder %s2256_s15, %s2256_s15 }
  0xa1   : > { %1916 = vmatpush3.bf16.msra.mxu0 %v1913_v7  ;;  %v1256_v7 = vld [vmem:[#allocation9 + $0x18] sm:$0xff] }
  0xa2   : > { %1819 = vmatprep.subr.msk.mxu0 %vm706_vm3, %v692_v12  ;;  %p2941_p10 = scmp.ne.s32.totalorder %s2940_s2, 0  ;;  %p2265_p6 = por %p2264_p5, %p2263_p3 }
  0xa3   : > { %1928 = vmatpush3.bf16.msra.mxu1 %v2688_v19 }
  0xa4   : > { %1814 = vmatmul.mubr.msk.f32.vlgmr.msra.gmra.mrb[0].mxu0 %vm590_vm1, %v576_v17  ;;  %1935 = vmatprep.subr.bf16.mxu1 %v2386_v8  ;;  %v1255_v17 = vld [vmem:[#allocation9 + $0x10] sm:$0xff]  ;;  %p2258_p11 = pnand %p2257_p8, %p2941_p10 }
  0xa5   : > { %1820 = vmatpush3.msk.msra.mxu0 %vm706_vm3, %v692_v12  ;;  %1816 = vmatprep.mubr.msk.f32.mxu0 %vm590_vm1, %v577_v18  ;;  %v1258_v18 = vld [vmem:[#allocation9 + $0x28] sm:$0xff] }
  0xa6   : > { %1917 = vmatprep.subr.bf16.mxu0 %v2386_v8  ;;  %p2259_p0 = pneg %p2258_p11 }
  0xa8   : > { %1817 = vmatmul.mubr.msk.f32.gmra.mrb[2].mxu0 %vm590_vm1, %v578_v20  ;;  %v1943_v20 = vpack.c.bf16 %v1255_v17, %v1253_v16  ;;  %v1388_v17 = vld [vmem:[#allocation10 + $0x50] sm:$0xff]  ;;  %p2266_p7 = pnand %p2265_p6, %p2259_p0 }
  0xa9   : > { %1821 = vmatprep.mubr.msk.f32.mxu0 %vm693_vm4, %v688_v21 }
  0xac   : > { %1822 = vmatmul.mubr.msk.f32.vlgmr.msra.gmra.mrb[0].mxu0 %vm693_vm4, %v689_v22  ;;  %v1257_v22 = vld [vmem:[#allocation9 + $0x20] sm:$0xff] }
  0xad   : > { %1919 = vmatpush3.bf16.msra.mxu0 %v2678_v13  ;;  %1824 = vmatprep.mubr.msk.f32.mxu0 %vm693_vm4, %v690_v23  ;;  %v1259_v23 = vld [vmem:[#allocation9 + $0x30] sm:$0xff] }
  0xae   : > { %1920 = vmatprep.subr.bf16.mxu0 %v2386_v8 }
  0xb0   : > { %1825 = vmatmul.mubr.msk.f32.gmra.mrb[2].mxu0 %vm693_vm4, %v691_v24 }
  0xb1   : > { %1922 = vmatpush3.bf16.msra.mxu0 %v2688_v19  ;;  %1835 = vmatprep.mubr.msk.f32.mxu0 %vm2387_vm2, %v2388_v10 }
  0xb2   : > { %1929 = vmatprep.subr.bf16.mxu0 %v2386_v8 }
  0xb4   : > { %1836 = vmatmul.mubr.msk.f32.vlgmr.msra.gmra.mrb[4].mxu0 %vm590_vm1, %v814_v25 }
  0xb5   : > { %1931 = vmatpush3.bf16.msra.mxu0 %v2678_v13  ;;  %1857 = vmatprep.mubr.msk.f32.mxu0 %vm2387_vm2, %v2388_v10 }
  0xb6   : > { %1932 = vmatprep.subr.bf16.mxu0 %v2386_v8 }
  0xb9   : > { %1934 = vmatpush3.bf16.msra.mxu0 %v2688_v19 }
 0x110   : > { %v2716_v35 = vpop.permute.xlu0 %896 }
 0x17f   : > { %v1823_v27 = vpop.f32.mrb[0].mxu0 }
 0x180   : > { %v1981_v28 = vadd.f32 %v1823_v27, %v1714_v26  ;;  %v776_v29 = vpop.f32.mrb[1].mxu0 }
 0x181   : > { %v1982_v30 = vadd.f32 %v1714_v26, %v776_v29 }
 0x182   : > { %801 = vst.msk [vmem:[#allocation2 + $0x8] sm:$0xff] %vm799_vm5, %v1981_v28  ;;  %v1263_v28 = vlaneseq }
 0x183   : > { %800 = vst.msk [vmem:[#allocation2] sm:$0xff] %vm799_vm5, %v1982_v30  ;;  %v1826_v31 = vpop.f32.mrb[2].mxu0  ;;  %v1261_v30 = vld [vmem:[%s2890_s9] sm:$0x3] }
 0x184   : > { %v1983_v32 = vadd.f32 %v1826_v31, %v1714_v26  ;;  %v786_v33 = vpop.f32.mrb[3].mxu0  ;;  %v1264_v29 = vshrl.u32 %v1263_v28, 7 }
 0x185   : > { %v1984_v34 = vadd.f32 %v1714_v26, %v786_v33 }
 0x186   : > { %803 = vst.msk [vmem:[#allocation2 + $0x18] sm:$0xff] %vm799_vm5, %v1983_v32  ;;  %v1269_v31 = vsub.s32 1, %v1264_v29 }
 0x187   : > { %802 = vst.msk [vmem:[#allocation2 + $0x10] sm:$0xff] %vm799_vm5, %v1984_v34  ;;  %v885_v36 = vpop.f32.mrb[4].mxu0 }
 0x188   : > { %v899_v37 = vadd.f32 %v2716_v35, %v885_v36  ;;  %v1837_v38 = vpop.f32.mrb[5].mxu0  ;;  %v2748_v32 = vrot.slane %v1261_v30, %v1269_v31 }
 0x189   : > { %v928_v60 = vld [vmem:[#allocation2 + $0x8] sm:$0xff] }
 0x18a   : > { %901 = vrot.lane.b32.xlu0 %v899_v37, %s2389_s17  ;;  %v815_v39 = vld [vmem:[#allocation2] sm:$0xff]  ;;  %v1265_v37 = vsub.s32 0, %v1264_v29 }
 0x18b   : > { %v889_v40 = vadd.f32 %v885_v36, %v815_v39 }
 0x18c   : > { %v2752_v38 = vrot.slane %v1261_v30, %v1265_v37  ;;  %v2782_v37 = vld [vmem:[%s2892_s11] ss:$0 sm:$0xff] }
 0x18d   : > { %v1726_v41 = vmul.f32 -1.442695, %v889_v40 }
 0x18e   : > { %917 = vrot.lane.b32.xlu0 %v814_v25, %s2390_s24  ;;  %v1947_v25 = vpack.c.bf16 %v1259_v23, %v1257_v22  ;;  %v1392_v23 = vld [vmem:[#allocation10 + $0x70] sm:$0xff] }
 0x18f   : > { %2104 = vpow2.f32 %v1726_v41 }
 0x199   : > { %v2105_v42 = vpop.eup %2104 }
 0x19a   : > { %v893_v43 = vadd.f32 1.0, %v2105_v42 }
 0x19c   : > { %2106 = vrcp.f32 %v893_v43 }
 0x1a6   : > { %v2107_v44 = vpop.eup %2106 }
 0x1a7   : > { %v911_v51 = vsub.f32 1.0, %v2107_v44 }
 0x1fc   : > { %v902_v45 = vpop.permute.xlu0 %901 }
 0x1fd   : > { %v904_v46 = vmul.f32 %v2107_v44, %v902_v45  ;;  %v1035_v45 = vld [vmem:[#allocation2 + $0x10] sm:$0xff] }
 0x1ff   : > { %906 = vrot.lane.b32.xlu1 %v904_v46, %s2389_s17 }
 0x200   : > { %v918_v50 = vpop.permute.xlu0 %917 }
 0x201   : > { %v920_v53 = vmul.f32 %v2107_v44, %v918_v50 }
 0x271   : > { %v907_v47 = vpop.permute.xlu1 %906 }
 0x272   : > { %v909_v48 = vadd.f32 %v907_v47, %v815_v39 }
 0x274   : > { %2108 = vtanh.f32 %v909_v48 }
 0x27e   : > { %v2109_v49 = vpop.eup %2108 }
 0x27f   : > { %913 = vrot.lane.b32.xlu1 %v2109_v49, %s2391_s12 }
 0x2f1   : > { %v914_v52 = vpop.permute.xlu1 %913 }
 0x2f2   : > { %v916_v54 = vmul.f32 %v914_v52, %v911_v51 }
 0x2f4   : > { %v921_v55 = vadd.f32 %v920_v53, %v916_v54 }
 0x2f6   : > { %923 = vrot.lane.b32.xlu1 %v921_v55, %s2391_s12 }
 0x368   : > { %v924_v56 = vpop.permute.xlu1 %923 }
 0x369   : > { %926 = vst.msk [vmem:[#allocation3] sm:$0xff] %vm590_vm1, %v924_v56  ;;  %1847 = vmatmul.mubr.msk.f32.vlgmr.msra.gmra.mrb[0].mxu1 %vm590_vm1, %v924_v56  ;;  %v1379_v56 = vld [vmem:[#allocation10 + $0x8] sm:$0xff] }
 0x36a   : > { %1937 = vmatpush3.bf16.msra.mxu1 %v2678_v13  ;;  %1868 = vmatprep.mubr.msk.f32.mxu1 %vm2387_vm2, %v2388_v10 }
 0x36b   : > { %1938 = vmatprep.subr.bf16.mxu1 %v2386_v8  ;;  %v1941_v8 = vpack.c.bf16 %v1256_v7, %v1254_v6  ;;  %v1382_v6 = vld [vmem:[#allocation10 + $0x20] sm:$0xff]  ;;  %v1383_v7 = vld [vmem:[#allocation10 + $0x28] sm:$0xff] }
 0x36d   : > { %1942 = vmatprep.subr.bf16.mxu0 %v1941_v8  ;;  %v1957_v8 = vpack.c.bf16 %v1383_v7, %v1382_v6 }
 0x36e   : > { %1940 = vmatpush3.bf16.msra.mxu1 %v2688_v19  ;;  %v1260_v19 = vld [vmem:[#allocation9 + $0x38] sm:$0xff] }
 0x36f   : > { %v1945_v21 = vpack.c.bf16 %v1260_v19, %v1258_v18  ;;  %v1389_v18 = vld [vmem:[#allocation10 + $0x58] sm:$0xff] }
 0x370   : > { %v1249_v26 = vld [vmem:[#allocation3] sm:$0xff]  ;;  %v1969_v19 = vpack.c.bf16 %v1389_v18, %v1388_v17 }
 0x43c   : > { %v997_v57 = vpop.f32.mrb[0].mxu1 }
 0x43d   : > { %v1008_v58 = vadd.f32 %v997_v57, %v2716_v35  ;;  %v1848_v59 = vpop.f32.mrb[1].mxu1  ;;  %v1001_v61 = vadd.f32 %v997_v57, %v928_v60 }
 0x43f   : > { %1010 = vrot.lane.b32.xlu0 %v1008_v58, %s2389_s17  ;;  %v1728_v62 = vmul.f32 -1.442695, %v1001_v61 }
 0x441   : > { %2110 = vpow2.f32 %v1728_v62 }
 0x44b   : > { %v2111_v63 = vpop.eup %2110 }
 0x44c   : > { %v1005_v0 = vadd.f32 1.0, %v2111_v63 }
 0x44e   : > { %2112 = vrcp.f32 %v1005_v0 }
 0x458   : > { %v2113_v1 = vpop.eup %2112 }
 0x459   : > { %v1020_v11 = vsub.f32 1.0, %v2113_v1  ;;  %v1026_v13 = vmul.f32 %v2113_v1, %v921_v55  ;;  %v1378_v55 = vld [vmem:[#allocation10] sm:$0xff] }
 0x45a   : > { %v1949_v57 = vpack.c.bf16 %v1379_v56, %v1378_v55 }
 0x45c   : > { %1950 = vmatprep.subr.bf16.mxu1 %v1949_v57 }
 0x4b1   : > { %v1011_v2 = vpop.permute.xlu0 %1010 }
 0x4b2   : > { %v1013_v3 = vmul.f32 %v2113_v1, %v1011_v2  ;;  %v1380_v1 = vld [vmem:[#allocation10 + $0x10] sm:$0xff]  ;;  %v1381_v2 = vld [vmem:[#allocation10 + $0x18] sm:$0xff] }
 0x4b4   : > { %1015 = vrot.lane.b32.xlu1 %v1013_v3, %s2389_s17  ;;  %v1953_v3 = vpack.c.bf16 %v1381_v2, %v1380_v1 }
 0x526   : > { %v1016_v4 = vpop.permute.xlu1 %1015 }
 0x527   : > { %v1018_v5 = vadd.f32 %v1016_v4, %v928_v60 }
 0x529   : > { %2114 = vtanh.f32 %v1018_v5 }
 0x533   : > { %v2115_v9 = vpop.eup %2114 }
 0x534   : > { %1022 = vrot.lane.b32.xlu0 %v2115_v9, %s2391_s12  ;;  %v1384_v9 = vld [vmem:[#allocation10 + $0x30] sm:$0xff] }
 0x5a6   : > { %v1023_v12 = vpop.permute.xlu0 %1022 }
 0x5a7   : > { %v1025_v14 = vmul.f32 %v1023_v12, %v1020_v11  ;;  %v1385_v11 = vld [vmem:[#allocation10 + $0x38] sm:$0xff] }
 0x5a8   : > { %v1961_v12 = vpack.c.bf16 %v1385_v11, %v1384_v9 }
 0x5a9   : > { %v2734_v15 = vadd.f32 %v1026_v13, %v1025_v14  ;;  %v1386_v14 = vld [vmem:[#allocation10 + $0x40] sm:$0xff] }
 0x5ab   : > { %1029 = vrot.lane.b32.xlu1 %v2734_v15, %s2391_s12 }
 0x61d   : > { %v1030_v24 = vpop.permute.xlu1 %1029 }
 0x61e   : > { %1033 = vst.msk [vmem:[#allocation3 + $0x8] sm:$0xff] %vm590_vm1, %v1030_v24  ;;  %1858 = vmatmul.mubr.msk.f32.vlgmr.msra.gmra.mrb[6].mxu0 %vm590_vm1, %v1030_v24  ;;  %v1393_v24 = vld [vmem:[#allocation10 + $0x78] sm:$0xff] }
 0x61f   : > { %1944 = vmatpush1.bf16.msra.mxu0 %v1943_v20  ;;  %1349 = vmatprep.mubr.f32.mxu0 %v2388_v10  ;;  %v1390_v20 = vld [vmem:[#allocation10 + $0x60] sm:$0xff] }
 0x620   : > { %1946 = vmatprep.subr.bf16.mxu0 %v1945_v21  ;;  %v1391_v21 = vld [vmem:[#allocation10 + $0x68] sm:$0xff] }
 0x621   : > { %v1973_v22 = vpack.c.bf16 %v1391_v21, %v1390_v20 }
 0x623   : > { %1948 = vmatpush1.bf16.msra.mxu0 %v1947_v25  ;;  %v1977_v25 = vpack.c.bf16 %v1393_v24, %v1392_v23 }
 0x625   : > { %v1250_v27 = vld [vmem:[#allocation3 + $0x8] sm:$0xff] }
 0x626   : > { %1733 = vmatmul.mubr.msk.f32.vlgmr.msra.gmra.mrb[8].mxu0 %vm590_vm1, %v1249_v26 }
 0x627   : > { %1355 = vmatprep.mubr.f32.mxu0 %v2388_v10 }
 0x62a   : > { %1734 = vmatmul.mubr.msk.f32.gmra.mrb[10].mxu0 %vm590_vm1, %v1250_v27 }
 0x62b   : > { %1361 = vmatprep.mubr.f32.mxu0 %v2388_v10 }
 0x6f1   : > { %v1104_v33 = vpop.f32.mrb[6].mxu0 }
 0x6f2   : > { %v1115_v34 = vadd.f32 %v1104_v33, %v2716_v35  ;;  %v1859_v36 = vpop.f32.mrb[7].mxu0  ;;  %v1108_v46 = vadd.f32 %v1104_v33, %v1035_v45 }
 0x6f4   : > { %1117 = vrot.lane.b32.xlu0 %v1115_v34, %s2389_s17  ;;  %v1730_v47 = vmul.f32 -1.442695, %v1108_v46 }
 0x6f6   : > { %2116 = vpow2.f32 %v1730_v47 }
 0x6f9   : > { %v1351_v39 = vpop.f32.mrb[8].mxu0 }
 0x6fa   : > { %v1352_v40 = vadd.f32 %v1351_v39, %v2752_v38  ;;  %v1353_v41 = vpop.f32.mrb[9].mxu0 }
 0x6fb   : > { %v1354_v0 = vadd.f32 %v1353_v41, %v2748_v32 }
 0x6fc   : > { %1510 = vst [vmem:[%s2655_s27] sm:$0xff] %v1352_v40 }
 0x6fd   : > { %v1357_v42 = vpop.f32.mrb[10].mxu0  ;;  %v1374_v4 = vmax.f32 %v1354_v0, 0.0 }
 0x6fe   : > { %v1358_v43 = vadd.f32 %v1357_v42, %v2752_v38  ;;  %v2757_v44 = vpop.f32.mrb[11].mxu0 }
 0x700   : > { %1512 = vst [vmem:[%s2655_s27 + $0x10] sm:$0xff] %v1358_v43  ;;  %v2117_v48 = vpop.eup %2116 }
 0x701   : > { %v1112_v49 = vadd.f32 1.0, %v2117_v48 }
 0x703   : > { %2118 = vrcp.f32 %v1112_v49 }
 0x70d   : > { %v2119_v50 = vpop.eup %2118 }
 0x70e   : > { %v1127_v59 = vsub.f32 1.0, %v2119_v50  ;;  %v1133_v61 = vmul.f32 %v2119_v50, %v2734_v15  ;;  %v1387_v15 = vld [vmem:[#allocation10 + $0x48] sm:$0xff] }
 0x70f   : > { %v1965_v16 = vpack.c.bf16 %v1387_v15, %v1386_v14 }
 0x766   : > { %v1118_v51 = vpop.permute.xlu0 %1117 }
 0x767   : > { %v1120_v52 = vmul.f32 %v2119_v50, %v1118_v51  ;;  %v1142_v50 = vld [vmem:[#allocation2 + $0x18] sm:$0xff] }
 0x769   : > { %1122 = vrot.lane.b32.xlu1 %v1120_v52, %s2389_s17 }
 0x7db   : > { %v1123_v53 = vpop.permute.xlu1 %1122 }
 0x7dc   : > { %v1125_v54 = vadd.f32 %v1123_v53, %v1035_v45 }
 0x7de   : > { %2120 = vtanh.f32 %v1125_v54 }
 0x7e8   : > { %v2121_v58 = vpop.eup %2120 }
 0x7e9   : > { %1129 = vrot.lane.b32.xlu0 %v2121_v58, %s2391_s12 }
 0x85b   : > { %v1130_v60 = vpop.permute.xlu0 %1129 }
 0x85c   : > { %v1132_v62 = vmul.f32 %v1130_v60, %v1127_v59 }
 0x85e   : > { %v2763_v63 = vadd.f32 %v1133_v61, %v1132_v62 }
 0x860   : > { %1136 = vrot.lane.b32.xlu1 %v2763_v63, %s2391_s12 }
 0x8d2   : > { %v1137_v5 = vpop.permute.xlu1 %1136 }
 0x8d3   : > { %1140 = vst.msk [vmem:[#allocation3 + $0x10] sm:$0xff] %vm590_vm1, %v1137_v5  ;;  %1869 = vmatmul.mubr.msk.f32.vlgmr.msra.gmra.mrb[2].mxu1 %vm590_vm1, %v1137_v5 }
 0x8d4   : > { %1952 = vmatpush3.bf16.msra.mxu1 %v1949_v57  ;;  %1903 = vmatprep.mubr.f32.mxu1 %v1374_v4 }
 0x8d5   : > { %1954 = vmatprep.subr.bf16.mxu1 %v1953_v3 }
 0x8d8   : > { %1956 = vmatpush3.bf16.msra.mxu1 %v1953_v3 }
 0x8d9   : > { %1958 = vmatprep.subr.bf16.mxu1 %v1957_v8 }
 0x8da   : > { %v1251_v13 = vld [vmem:[#allocation3 + $0x10] sm:$0xff] }
 0x8db   : > { %1735 = vmatmul.mubr.msk.f32.gmra.mrb[12].mxu0 %vm590_vm1, %v1251_v13 }
 0x8dc   : > { %1960 = vmatpush3.bf16.msra.mxu1 %v1957_v8  ;;  %1367 = vmatprep.mubr.f32.mxu0 %v2388_v10  ;;  %v1360_v10 = vadd.f32 %v2757_v44, %v2748_v32 }
 0x8dd   : > { %1962 = vmatprep.subr.bf16.mxu1 %v1961_v12 }
 0x8de   : > { %v1375_v26 = vmax.f32 %v1360_v10, 0.0 }
 0x8e0   : > { %1964 = vmatpush3.bf16.msra.mxu1 %v1961_v12 }
 0x8e1   : > { %1966 = vmatprep.subr.bf16.mxu1 %v1965_v16 }
 0x8e4   : > { %1968 = vmatpush3.bf16.msra.mxu1 %v1965_v16 }
 0x8e5   : > { %1970 = vmatprep.subr.bf16.mxu1 %v1969_v19 }
 0x8e8   : > { %1972 = vmatpush3.bf16.msra.mxu1 %v1969_v19 }
 0x8e9   : > { %1974 = vmatprep.subr.bf16.mxu1 %v1973_v22 }
 0x8ec   : > { %1976 = vmatpush3.bf16.msra.mxu1 %v1973_v22 }
 0x8ed   : > { %1978 = vmatprep.subr.bf16.mxu1 %v1977_v25 }
 0x8f0   : > { %1980 = vmatpush3.bf16.msra.mxu1 %v1977_v25 }
 0x8f3   : > { %1904 = vmatmul.mubr.f32.vlgmr.msra.gmra.mrb[4].mxu1 %v1375_v26 }
 0x9a6   : > { %v1211_v27 = vpop.f32.mrb[2].mxu1 }
 0x9a7   : > { %v1222_v28 = vadd.f32 %v1211_v27, %v2716_v35  ;;  %v1870_v29 = vpop.f32.mrb[3].mxu1  ;;  %v1215_v51 = vadd.f32 %v1211_v27, %v1142_v50 }
 0x9a9   : > { %1224 = vrot.lane.b32.xlu0 %v1222_v28, %s2389_s17  ;;  %v1732_v52 = vmul.f32 -1.442695, %v1215_v51 }
 0x9ae   : > { %v1363_v30 = vpop.f32.mrb[12].mxu0 }
 0x9af   : > { %v1364_v31 = vadd.f32 %v1363_v30, %v2752_v38  ;;  %v1365_v33 = vpop.f32.mrb[13].mxu0 }
 0x9b0   : > { %v1366_v34 = vadd.f32 %v1365_v33, %v2748_v32 }
 0x9b1   : > { %1514 = vst [vmem:[%s2655_s27 + $0x20] sm:$0xff] %v1364_v31 }
 0x9b2   : > { %v1376_v36 = vmax.f32 %v1366_v34, 0.0 }
 0x9b4   : > { %1906 = vmatprep.mubr.f32.mxu1 %v1376_v36 }
 0x9c6   : > { %v1905_v39 = vpop.f32.mrb[4].mxu1 }
 0x9c7   : > { %v1473_v35 = vadd.f32 %v1905_v39, %v2782_v37  ;;  %v1467_v40 = vpop.f32.mrb[5].mxu1 }
 0x9c8   : > { %v1468_v41 = vadd.f32 %v2782_v37, %v1467_v40 }
 0x9c9   : > { %v1739_v42 = vmul.f32 -1.442695, %v1473_v35 }
 0x9ca   : > { %v1738_v43 = vmul.f32 -1.442695, %v1468_v41 }
 0x9cb   : > { %2122 = vpow2.f32 %v1739_v42 }
 0x9cc   : > { %2124 = vpow2.f32 %v1738_v43 }
 0x9d5   : > { %v2123_v44 = vpop.eup %2122 }
 0x9d6   : > { %v2125_v45 = vpop.eup %2124  ;;  %v1499_v46 = vadd.f32 1.0, %v2123_v44 }
 0x9d7   : > { %v1498_v47 = vadd.f32 1.0, %v2125_v45 }
 0x9d8   : > { %2126 = vrcp.f32 %v1499_v46 }
 0x9d9   : > { %2128 = vrcp.f32 %v1498_v47 }
 0x9da   : > { %2130 = vpow2.f32 %v1732_v52 }
 0x9e2   : > { %v2127_v48 = vpop.eup %2126 }
 0x9e3   : > { %v2129_v49 = vpop.eup %2128  ;;  %1513 = vst [vmem:[%s2655_s27 + $0x18] sm:$0xff] %v2127_v48 }
 0x9e4   : > { %1511 = vst [vmem:[%s2655_s27 + $0x8] sm:$0xff] %v2129_v49  ;;  %v2131_v53 = vpop.eup %2130 }
 0x9e5   : > { %v1219_v54 = vadd.f32 1.0, %v2131_v53 }
 0x9e7   : > { %2132 = vrcp.f32 %v1219_v54 }
 0x9f1   : > { %v2133_v55 = vpop.eup %2132 }
 0x9f2   : > { %v1234_v61 = vsub.f32 1.0, %v2133_v55  ;;  %v1240_v0 = vmul.f32 %v2133_v55, %v2763_v63 }
 0xa1b   : > { %v1225_v56 = vpop.permute.xlu0 %1224 }
 0xa1c   : > { %v1227_v57 = vmul.f32 %v2133_v55, %v1225_v56 }
 0xa1e   : > { %1229 = vrot.lane.b32.xlu1 %v1227_v57, %s2389_s17 }
 0xa90   : > { %v1230_v58 = vpop.permute.xlu1 %1229 }
 0xa91   : > { %v1232_v59 = vadd.f32 %v1230_v58, %v1142_v50 }
 0xa93   : > { %2134 = vtanh.f32 %v1232_v59 }
 0xa9d   : > { %v2135_v60 = vpop.eup %2134 }
 0xa9e   : > { %1236 = vrot.lane.b32.xlu0 %v2135_v60, %s2391_s12 }
 0xb10   : > { %v1237_v62 = vpop.permute.xlu0 %1236 }
 0xb11   : > { %v1239_v1 = vmul.f32 %v1237_v62, %v1234_v61 }
 0xb13   : > { %v1241_v2 = vadd.f32 %v1240_v0, %v1239_v1 }
 0xb15   : > { %1243 = vrot.lane.b32.xlu1 %v1241_v2, %s2391_s12 }
 0xb87   : > { %v1244_v3 = vpop.permute.xlu1 %1243 }
 0xb88   : > { %1247 = vst.msk [vmem:[#allocation3 + $0x18] sm:$0xff] %vm590_vm1, %v1244_v3  ;;  %1248 = vst.msk [vmem:[#allocation13] sm:$0xff] %vm590_vm1, %v1244_v3 }
 0xb8f   : > { %v1252_v4 = vld [vmem:[#allocation3 + $0x18] sm:$0xff] }
 0xb90   : > { %1736 = vmatmul.mubr.msk.f32.gmra.mrb[14].mxu0 %vm590_vm1, %v1252_v4 }
 0xc63   : > { %v1369_v5 = vpop.f32.mrb[14].mxu0 }
 0xc64   : > { %v1370_v6 = vadd.f32 %v1369_v5, %v2752_v38  ;;  %v1371_v7 = vpop.f32.mrb[15].mxu0 }
 0xc65   : > { %v1372_v8 = vadd.f32 %v1371_v7, %v2748_v32 }
 0xc66   : > { %1516 = vst [vmem:[%s2655_s27 + $0x30] sm:$0xff] %v1370_v6 }
 0xc67   : > { %v1377_v63 = vmax.f32 %v1372_v8, 0.0 }
 0xc69   : > { %1907 = vmatmul.mubr.f32.gmra.mrb[6].mxu1 %v1377_v63 }
 0xc6a   : > { %2269 = shalt.err (!%p2266_p7)
}
 0xc6b   : > { %s2942_s30 = sld [smem:[#allocation31_spill]] }
 0xc71   : > { %s2943_s17 = smov %s2942_s30  ;;  %s2270_s22 = scalar_lea.hbm %s2942_s30, 128 }
 0xc72   : > { %p2271_p9 = scmp.ne.s32.totalorder %s2943_s17, %s2270_s22  ;;  %p2276_p1 = scmp.lt.u32.totalorder %s2270_s22, %s2943_s17 }
 0xc74   : > { %p2272_p12 = pnand %p2271_p9, %p2941_p10 }
 0xc76   : > { %p2273_p2 = pneg %p2272_p12 }
 0xc78   : > { %p2278_p13 = pnand %p2276_p1, %p2273_p2 }
 0xc7a   : > { %2281 = shalt.err (!%p2278_p13)
}
 0xc7b   : > { %2007 = dma.vmem_to_hbm [thread:$0]  (%p2941_p10), %s1552_s23, 128, %s2943_s17, [#allocation14]  }
 0xc7c   : > { %s2944_s20 = sld [smem:[#allocation26_spill]]  ;;  %s1751_s21 = sshll.u32 %s2368_s28, 10 }
 0xc7d   : > { %s1535_s23 = sshll.u32 %s2655_s27, 4  ;;  %s2945_s13 = sld [smem:[#allocation30_spill]]  ;;  %s2825_s23 = int_to_ptr.vmem [resolvable:$true] %s1535_s23 }
 0xc7e   : > { %s2831_s22 = scalar_lea.sflag [#allocation6], %s544_s16  ;;  %s2282_s14 = scalar_lea.vmem %s2825_s23, 1024 }
 0xc7f   : > { %p2283_p4 = scmp.ne.s32.totalorder %s2825_s23, %s2282_s14  ;;  %s2393_s28 = smov [#allocation12]  }
 0xc80   : > { %s2286_s24 = sshll.u32 %s2393_s28, 4  ;;  %s2287_s24 = int_to_ptr.vmem [resolvable:$false] %s2286_s24 }
 0xc81   : > { %s2288_s12 = scalar_lea.vmem %s2287_s24, 2048  ;;  %p2289_p3 = scmp.lt.s32.totalorder %s2825_s23, %s2287_s24 }
 0xc82   : > { %p2946_p8 = scmp.ne.s32.totalorder %s2944_s20, 0  ;;  %p2290_p5 = scmp.lt.s32.totalorder %s2288_s12, %s2282_s14 }
 0xc83   : > { %s2823_s30 = scalar_lea.hbm %s2945_s13, %s1751_s21 }
 0xc84   : > { %p2284_p11 = pnand %p2283_p4, %p2946_p8  ;;  %p2291_p6 = por %p2290_p5, %p2289_p3 }
 0xc86   : > { %p2285_p0 = pneg %p2284_p11 }
 0xc88   : > { %p2292_p7 = pnand %p2291_p6, %p2285_p0 }
 0xd3c   : > { %v1908_v32 = vpop.f32.mrb[6].mxu1 }
 0xd3d   : > { %v1483_v38 = vadd.f32 %v1908_v32, %v2782_v37  ;;  %v1477_v9 = vpop.f32.mrb[7].mxu1 }
 0xd3e   : > { %v1478_v11 = vadd.f32 %v2782_v37, %v1477_v9 }
 0xd3f   : > { %v1741_v12 = vmul.f32 -1.442695, %v1483_v38 }
 0xd40   : > { %v1740_v13 = vmul.f32 -1.442695, %v1478_v11 }
 0xd41   : > { %2136 = vpow2.f32 %v1741_v12 }
 0xd42   : > { %2138 = vpow2.f32 %v1740_v13 }
 0xd4b   : > { %v2137_v14 = vpop.eup %2136 }
 0xd4c   : > { %v2139_v15 = vpop.eup %2138  ;;  %v1501_v16 = vadd.f32 1.0, %v2137_v14 }
 0xd4d   : > { %v1500_v17 = vadd.f32 1.0, %v2139_v15 }
 0xd4e   : > { %2140 = vrcp.f32 %v1501_v16 }
 0xd4f   : > { %2142 = vrcp.f32 %v1500_v17 }
 0xd58   : > { %v2141_v18 = vpop.eup %2140 }
 0xd59   : > { %v2143_v19 = vpop.eup %2142  ;;  %1517 = vst [vmem:[%s2655_s27 + $0x38] sm:$0xff] %v2141_v18 }
 0xd5a   : > { %1515 = vst [vmem:[%s2655_s27 + $0x28] sm:$0xff] %v2143_v19 }
 0xd5b   : > { %2295 = shalt.err (!%p2292_p7)
}
 0xd5c   : > { %s2296_s16 = scalar_lea.hbm %s2823_s30, 1024  ;;  %s2300_s18 = scalar_lea.hbm %s2945_s13, 4096 }
 0xd5d   : > { %p2297_p9 = scmp.ne.s32.totalorder %s2823_s30, %s2296_s16  ;;  %p2301_p1 = scmp.lt.u32.totalorder %s2823_s30, %s2945_s13 }
 0xd5e   : > { %p2302_p13 = scmp.lt.u32.totalorder %s2300_s18, %s2296_s16  ;;  %p2304_p11 = scmp.lt.u32.totalorder %s2296_s16, %s2823_s30 }
 0xd5f   : > { %p2298_p12 = pnand %p2297_p9, %p2946_p8 }
 0xd60   : > { %p2303_p4 = por %p2302_p13, %p2301_p1 }
 0xd61   : > { %p2299_p2 = pneg %p2298_p12 }
 0xd62   : > { %p2305_p0 = por %p2304_p11, %p2303_p4 }
 0xd64   : > { %p2306_p3 = pnand %p2305_p0, %p2299_p2 }
 0xd66   : > { %2309 = shalt.err (!%p2306_p3)
}
 0xd67   : > { %s2394_s15 = smov 256   ;;  %s2395_s25 = smov 16  }
 0xd68   : > { %2005 = dma.vmem_to_hbm [thread:$0]  (%p2946_p8), %s2825_s23, 1024, %s2823_s30, %s2831_s22, %s2394_s15, %s2394_s15, %s2395_s25  }
 0xd69   : > { %2347 = dma.done.wait (%p2941_p10), [#allocation14], 128  }
 0xd6a   : > { %2349 = vsyncadd (%p2941_p10), [#allocation14], 4294967168 }
 0xd6b PF: > { %s2947_s14 = sld [smem:[#allocation23_spill]]  ;;  %s2948_s28 = sld [smem:[#allocation20_spill]] }
 0xd6c   : > { %s2949_s24 = sld [smem:[#allocation27_spill]] }
 0xd71   : > { %p2038_p5 = scmp.ge.s32.totalorder %s2947_s14, 2  ;;  %s1567_s12 = sand.u32 1, %s2948_s28  }
 0xd72   : > { %p2950_p6 = scmp.ne.s32.totalorder %s2949_s24, 0  ;;  %s1568_s16 = scalar_lea.sflag [#allocation6], %s1567_s12 }
 0xd74   : > { %p2025_p7 = pnand %p2038_p5, %p2950_p6 }
 0xd76   : > { %2351 = dma.done.wait (!%p2025_p7), %s1568_s16, 1024  }
 0xd77   : > { %2353 = vsyncadd (!%p2025_p7), %s1568_s16, 4294966272  ;;  %s31_s30 = sadd.s32 1, %s2947_s14   ;;  %s2951_s20 = sld [smem:[#allocation21_spill]] }
 0xd78   : > { %p28_p9 = scmp.ge.s32.totalorder %s31_s30, 6   ;;  %s2952_s27 = sld [smem:[#allocation28_spill]] }
 0xd79   : > { %s2953_s28 = sld [smem:[#allocation22_spill]]  ;;  %s2954_s29 = sld [smem:[#allocation25_spill]] }
 0xd7a   : > { %s2955_s25 = smov %s2360_s26  ;;  %30 = sbr.rel (!%p28_p9) target bundleno = 12 (0xc), region = 143 }
 0xd7d   : > { %s2956_s26 = smov %s2951_s20 }
 0xd81   :  { %1573 = vsyncpa [#allocation5], 1 }
 0xd82   :  { %1575 = vsyncpa [#allocation5 + $0x1], 1 }
 0xd83   :  { %1576 = vsyncpa [#allocation8], 1 }
 0xd84   :  { %1577 = vsyncpa [#allocation11], 1 }
 0xd85   :  { %1578 = vsyncpa [#allocation6], 1 }
 0xd86   :  { %1580 = vsyncpa [#allocation6 + $0x1], 1 }
 0xd87   :  { %1581 = vsyncpa [#allocation14], 1 }

// kernel: tpu_custom_call.1
= control target key start
LH: loop header
LB: loop body
LE: loop exit
PB: predicated region body
PF: predicated region fallthrough
CT: control target
= control target key end

     0   :  { %s2881_s0 = inlined_call_operand.vmem [shape: f32[16,8,32], index: 0, kind: input, shape index: {}]   ;;  %s2882_s1 = inlined_call_operand.vmem [shape: f32[16,8,4], index: 1, kind: input, shape index: {}]   ;;  %s2883_s2 = inlined_call_operand.hbm [shape: f32[8,32], index: 2, kind: input, shape index: {}]   ;;  %s2884_s3 = inlined_call_operand.vmem [shape: f32[32,96], index: 3, kind: input, shape index: {}]   ;;  %s2885_s4 = inlined_call_operand.vmem [shape: f32[4,96], index: 4, kind: input, shape index: {}]   ;;  %s2886_s5 = inlined_call_operand.hbm [shape: f32[32,96], index: 5, kind: input, shape index: {}]   ;;  %s2887_s6 = inlined_call_operand.vmem [shape: f32[1,96], index: 6, kind: input, shape index: {}]   ;;  %s2888_s7 = inlined_call_operand.vmem [shape: f32[1,32], index: 7, kind: input, shape index: {}]   ;;  %s2889_s8 = inlined_call_operand.hbm [shape: f32[32,256], index: 8, kind: input, shape index: {}]   ;;  %s2890_s9 = inlined_call_operand.vmem [shape: f32[1,256], index: 9, kind: input, shape index: {}]   ;;  %s2891_s10 = inlined_call_operand.hbm [shape: f32[128,128], index: 10, kind: input, shape index: {}]   ;;  %s2892_s11 = inlined_call_operand.vmem [shape: f32[1,128], index: 11, kind: input, shape index: {}]   ;;  %s2893_s12 = inlined_call_operand.hbm [shape: f32[16,8,256], index: 12, kind: output, shape index: {0}]   ;;  %s2894_s13 = inlined_call_operand.hbm [shape: f32[8,32], index: 13, kind: output, shape index: {1}]  }
   0x1   :  { %2916 = sst [smem:[#allocation29_spill]] %s2883_s2 }
   0x2   :  { %2917 = sst [smem:[#allocation30_spill]] %s2893_s12 }
   0x3   :  { %2918 = sst [smem:[#allocation31_spill]] %s2894_s13 }
   0x4   :  { %19 = vsyncpa [#allocation5], 0 }
   0x5   :  { %20 = vsyncpa [#allocation8], 0 }
   0x6   :  { %21 = vsyncpa [#allocation11], 0 }
   0x7   :  { %22 = vsyncpa [#allocation6], 0 }
   0x8   :  { %24 = vsyncpa [#allocation6 + $0x1], 0 }
   0x9   :  { %25 = vsyncpa [#allocation14], 0  ;;  %s2466_s25 = smov 0   ;;  %s2468_s26 = smov 0  }
   0xa   :  { %s2470_s27 = smov 0   ;;  %s2472_s28 = smov 0  }
   0xb   :  { %s2474_s29 = smov 0   ;;  %s2476_s30 = smov 0  }
   0xc LB: > { %2919 = sst [smem:[#allocation20_spill]] %s2356_s25  ;;  %s1695_s14 = sadd.s32 4294967295, %s2376_s30   ;;  %s2376_s30 = sphi %s2476_s30, %s31_s30   ;;  %s2372_s29 = sphi %s2474_s29, %s2954_s29   ;;  %s2368_s28 = sphi %s2472_s28, %s2953_s28   ;;  %s2364_s27 = sphi %s2470_s27, %s2952_s27   ;;  %s2360_s26 = sphi %s2468_s26, %s2956_s26   ;;  %s2356_s25 = sphi %s2466_s25, %s2955_s25  }
   0xd   : > { %2920 = sst [smem:[#allocation21_spill]] %s2364_s27  ;;  %s1696_s15 = sadd.s32 4294967294, %s2376_s30  }
   0xe   : > { %2921 = sst [smem:[#allocation22_spill]] %s2372_s29  ;;  %s40_s16 = sadd.s32 1, %s2372_s29 }
   0xf   : > { %2922 = sst [smem:[#allocation23_spill]] %s2376_s30  ;;  %s323_s17 = sadd.s32 1, %s2364_s27 }
  0x10   : > { %p41_p0 = scmp.ge.s32.totalorder %s40_s16, 4  ;;  %p333_p1 = scmp.ne.s32.totalorder %s2364_s27, %s2360_s26 }
  0x11   : > { %p2502_p2 = scmp.eq.s32.totalorder %s1695_s14, 3  ;;  %p339_p3 = scmp.ne.s32.totalorder %s2360_s26, %s2356_s25 }
  0x12   : > { %s2958_s16 = smov (%p41_p0, %s40_s16), 0  ;;  %p340_p5 = scmp.eq.s32.totalorder %s1696_s15, 3 }
  0x13   : > { %s2923_s18 = scalar_select %p2502_p2, 1, 0 }
  0x14   : > { %2925 = sst [smem:[#allocation25_spill]] %s2958_s16  ;;  %p2512_p4 = por %p2502_p2, %p333_p1 }
  0x15   : > { %2924 = sst [smem:[#allocation24_spill]] %s2923_s18  ;;  %s318_s20 = ssub.s32 %s2372_s29, %s2958_s16 }
  0x16   : > { %s2926_s19 = scalar_select %p2512_p4, 1, 0 }
  0x17   : > { %p1697_p6 = scmp.ge.s32.totalorder %s2376_s30, 1  ;;  %p321_p7 = scmp.eq.s32.totalorder %s318_s20, 0 }
  0x18   : > { %2927 = sst [smem:[#allocation26_spill]] %s2926_s19  ;;  %p2519_p8 = por %p340_p5, %p339_p3 }
  0x19   : > { %p373_p9 = scmp.lt.s32.totalorder %s2376_s30, 5  ;;  %p2531_p11 = scmp.eq.s32.totalorder %s1695_s14, 0 }
  0x1a   : > { %s2928_s21 = scalar_select %p2519_p8, 1, 0 }
  0x1b   : > { %s2525_s22 = scalar_select %p321_p7, %s2364_s27, %s323_s17  }
  0x1c   : > { %2929 = sst [smem:[#allocation27_spill]] %s2928_s21  ;;  %p2527_p10 = pnand %p1697_p6, %p373_p9 }
  0x1d   : > { %2930 = sst [smem:[#allocation28_spill]] %s2525_s22  ;;  %s2378_s15 = smov [#allocation7]  }
  0x1e   : > { %s2931_s23 = scalar_select %p2527_p10, 1, 0 }
  0x1f   : > { %s2932_s24 = scalar_select %p2531_p11, 1, 0 }
  0x20   : > { %p2011_p12 = pneg %p2527_p10  ;;  %s404_s20 = sshll.u32 %s2378_s15, 4  ;;  %s405_s20 = int_to_ptr.vmem [resolvable:$true] %s404_s20 }
  0x21   : > { %s2379_s17 = smov [#allocation4]   ;;  %s2144_s14 = scalar_lea.hbm %s2886_s5, 512 }
  0x22   : > { %p2539_p13 = pnand %p2531_p11, %p2011_p12  ;;  %s388_s29 = sshll.u32 %s2379_s17, 4  ;;  %s389_s29 = int_to_ptr.vmem [resolvable:$true] %s388_s29 }
  0x23   : > { %p2145_p0 = scmp.ne.s32.totalorder %s2886_s5, %s2144_s14  ;;  %p2151_p6 = scmp.lt.u32.totalorder %s2144_s14, %s2886_s5 }
  0x24   : > { %p2551_p1 = pneg %p2539_p13 }
  0x26   : > { %p2147_p3 = pnand %p2551_p1, %p2145_p0 }
  0x28   : > { %p2148_p5 = pneg %p2147_p3 }
  0x2a   : > { %p2153_p7 = pnand %p2151_p6, %p2148_p5 }
  0x2c   : > { %2156 = shalt.err (!%p2153_p7)
}
  0x2d   : > { %s2157_s27 = scalar_lea.vmem %s405_s20, 512  ;;  %p2165_p4 = scmp.lt.s32.totalorder %s405_s20, %s405_s20 }
  0x2e   : > { %p2158_p9 = scmp.ne.s32.totalorder %s405_s20, %s2157_s27  ;;  %p2166_p2 = scmp.lt.s32.totalorder %s2157_s27, %s2157_s27 }
  0x30   : > { %p2160_p12 = pnand %p2158_p9, %p2551_p1  ;;  %p2167_p11 = por %p2166_p2, %p2165_p4 }
  0x32   : > { %p2161_p8 = pneg %p2160_p12 }
  0x34   : > { %p2168_p10 = pnand %p2167_p11, %p2161_p8 }
  0x36   : > { %2171 = shalt.err (!%p2168_p10)
}
  0x37   : > { %s2914_s25 = smov 128   ;;  %s2915_s21 = smov 8  }
  0x38   : > { %2017 = dma.hbm_to_vmem [thread:$0]  (!%p2539_p13), %s2886_s5, 512, %s405_s20, [#allocation8], %s2914_s25, %s2914_s25, %s2915_s21  }
  0x39   : > { %s2935_s2 = sld [smem:[#allocation29_spill]] }
  0x3f   : > { %s2172_s14 = scalar_lea.hbm %s2935_s2, 128 }
  0x40   : > { %p2173_p2 = scmp.ne.s32.totalorder %s2935_s2, %s2172_s14  ;;  %p2179_p10 = scmp.lt.u32.totalorder %s2172_s14, %s2935_s2 }
  0x42   : > { %p2175_p4 = pnand %p2173_p2, %p2551_p1 }
  0x44   : > { %p2176_p8 = pneg %p2175_p4 }
  0x46   : > { %p2181_p11 = pnand %p2179_p10, %p2176_p8 }
  0x48   : > { %2184 = shalt.err (!%p2181_p11)
}
  0x49   : > { %s2185_s12 = scalar_lea.vmem %s389_s29, 128  ;;  %p2193_p6 = scmp.lt.s32.totalorder %s389_s29, %s389_s29 }
  0x4a   : > { %p2186_p0 = scmp.ne.s32.totalorder %s389_s29, %s2185_s12  ;;  %p2194_p7 = scmp.lt.s32.totalorder %s2185_s12, %s2185_s12 }
  0x4c   : > { %p2188_p3 = pnand %p2186_p0, %p2551_p1  ;;  %p2195_p9 = por %p2194_p7, %p2193_p6 }
  0x4e   : > { %p2189_p5 = pneg %p2188_p3 }
  0x50   : > { %p2196_p12 = pnand %p2195_p9, %p2189_p5 }
  0x52   : > { %2199 = shalt.err (!%p2196_p12)
}
  0x53   : > { %2014 = dma.hbm_to_vmem [thread:$0]  (!%p2539_p13), %s2935_s2, 128, %s389_s29, [#allocation5]  }
  0x54   : > { %s2382_s13 = smov [#allocation9]   ;;  %s2200_s17 = scalar_lea.hbm %s2889_s8, 1024 }
  0x55   : > { %s423_s18 = sshll.u32 %s2382_s13, 4  ;;  %p2201_p2 = scmp.ne.s32.totalorder %s2889_s8, %s2200_s17  ;;  %s424_s18 = int_to_ptr.vmem [resolvable:$true] %s423_s18 }
  0x56   : > { %p2207_p10 = scmp.lt.u32.totalorder %s2200_s17, %s2889_s8 }
  0x57   : > { %p2203_p4 = pnand %p2201_p2, %p2551_p1 }
  0x59   : > { %p2204_p8 = pneg %p2203_p4 }
  0x5b   : > { %p2209_p11 = pnand %p2207_p10, %p2204_p8 }
  0x5d   : > { %2212 = shalt.err (!%p2209_p11)
}
  0x5e   : > { %s2213_s29 = scalar_lea.vmem %s424_s18, 1024  ;;  %p2221_p6 = scmp.lt.s32.totalorder %s424_s18, %s424_s18 }
  0x5f   : > { %p2214_p0 = scmp.ne.s32.totalorder %s424_s18, %s2213_s29  ;;  %p2222_p7 = scmp.lt.s32.totalorder %s2213_s29, %s2213_s29 }
  0x61   : > { %p2216_p3 = pnand %p2214_p0, %p2551_p1  ;;  %p2223_p9 = por %p2222_p7, %p2221_p6 }
  0x63   : > { %p2217_p5 = pneg %p2216_p3 }
  0x65   : > { %p2224_p12 = pnand %p2223_p9, %p2217_p5 }
  0x67   : > { %2227 = shalt.err (!%p2224_p12)
}
  0x68   : > { %s2383_s19 = smov 256   ;;  %s2384_s20 = smov 16  }
  0x69   : > { %2020 = dma.hbm_to_vmem [thread:$0]  (!%p2539_p13), %s2889_s8, 1024, %s424_s18, [#allocation8], %s2383_s19, %s2383_s19, %s2384_s20  }
  0x6a   : > { %s2385_s30 = smov [#allocation10]   ;;  %s2228_s27 = scalar_lea.hbm %s2891_s10, 2048 }
  0x6b   : > { %s439_s22 = sshll.u32 %s2385_s30, 4  ;;  %p2229_p2 = scmp.ne.s32.totalorder %s2891_s10, %s2228_s27  ;;  %s440_s22 = int_to_ptr.vmem [resolvable:$true] %s439_s22 }
  0x6c   : > { %p2235_p10 = scmp.lt.u32.totalorder %s2228_s27, %s2891_s10 }
  0x6d   : > { %p2231_p4 = pnand %p2229_p2, %p2551_p1 }
  0x6f   : > { %p2232_p8 = pneg %p2231_p4 }
  0x71   : > { %p2237_p11 = pnand %p2235_p10, %p2232_p8 }
  0x73   : > { %2240 = shalt.err (!%p2237_p11)
}
  0x74   : > { %s2241_s18 = scalar_lea.vmem %s440_s22, 2048  ;;  %p2249_p6 = scmp.lt.s32.totalorder %s440_s22, %s440_s22 }
  0x75   : > { %p2242_p0 = scmp.ne.s32.totalorder %s440_s22, %s2241_s18  ;;  %p2250_p7 = scmp.lt.s32.totalorder %s2241_s18, %s2241_s18 }
  0x77   : > { %p2244_p3 = pnand %p2242_p0, %p2551_p1  ;;  %p2251_p9 = por %p2250_p7, %p2249_p6 }
  0x79   : > { %p2245_p5 = pneg %p2244_p3 }
  0x7b   : > { %p2252_p12 = pnand %p2251_p9, %p2245_p5 }
  0x7d   : > { %2255 = shalt.err (!%p2252_p12)
}
  0x7e   : > { %s2936_s19 = smov 8   ;;  %s2937_s20 = smov 128  }
  0x7f   : > { %2023 = dma.hbm_to_vmem [thread:$0]  (!%p2539_p13), %s2891_s10, 2048, %s440_s22, [#allocation11], %s2937_s20, %s2937_s20, %s2936_s19  }
  0x80   : > { %p2938_p2 = scmp.ne.s32.totalorder %s2931_s23, 0 }
  0x81   : > { %p2939_p1 = scmp.ne.s32.totalorder (!%p2938_p2), %s2932_s24, 0 }
  0x82   : > { %482 = sbr.rel (%p2938_p2) target bundleno = 3435 (0xd6b), region = 68 }
  0x89   : > { %2335 = dma.done.wait (%p2939_p1), [#allocation5], 128  }
  0x8a   : > { %2337 = vsyncadd (%p2939_p1), [#allocation5], 4294967168 }
  0x8b   : > { %2339 = dma.done.wait (%p2939_p1), [#allocation8], 1536  }
  0x8c   : > { %2341 = vsyncadd (%p2939_p1), [#allocation8], 4294965760 }
  0x8d   : > { %2343 = dma.done.wait (%p2939_p1), [#allocation11], 2048  }
  0x8e   : > { %2345 = vsyncadd (%p2939_p1), [#allocation11], 4294965248  ;;  %s544_s16 = sand.u32 1, %s2360_s26   ;;  %s1709_s23 = sshll.u32 %s2368_s28, 2 }
  0x8f   : > { %s1708_s15 = sshll.u32 %s544_s16, 6  ;;  %p550_p13 = scmp.lt.s32.totalorder %s1709_s23, 15 }
  0x90   : > { %s2655_s27 = scalar_lea.vmem [#allocation12], %s1708_s15  ;;  %p1713_p4 = scmp.ne.s32.totalorder %s2368_s28, 0 }
  0x91   : > { %s2960_s23 = smov (!%p550_p13, %s1709_s23), 15  ;;  %v572_v0 = vld [vmem:[#allocation4] sm:$0xff] (!%p1713_p4)  ;;  %vm573_vm0 = vcmask (!%p1713_p4), 261120  }
  0x92   : > { %s1710_s25 = sshll.u32 %s2960_s23, 3  ;;  %571 = sbr.rel (%p1713_p4) target bundleno = 153 (0x99), region = 88  ;;  %574 = vst.msk [vmem:[#allocation13] sm:$0xff] (!%p1713_p4), %vm573_vm0, %v572_v0 }
  0x93   : > { %s2648_s22 = scalar_lea.vmem %s2881_s0, %s1710_s25  ;;  %s2653_s24 = scalar_lea.vmem %s2882_s1, %s1710_s25 }
  0x99 PF: > { %v579_v1 = vld [vmem:[%s2884_s3] sm:$0xff]  ;;  %v580_v2 = vld [vmem:[%s2884_s3 + $0x8] sm:$0xff]  ;;  %v581_v3 = vld [vmem:[%s2884_s3 + $0x10] sm:$0xff]  ;;  %vm590_vm1 = vcmask 261120   ;;  %v2386_v8 = vmov 0.0|0.0   ;;  %vm2387_vm2 = vmmov 0  }
  0x9a   : > { %v1909_v4 = vpack.c.bf16 %v580_v2, %v579_v1  ;;  %v582_v5 = vld [vmem:[%s2884_s3 + $0x18] sm:$0xff]  ;;  %v575_v6 = vld [vmem:[%s2648_s22] sm:$0xff]  ;;  %1923 = vmatprep.subr.bf16.mxu1 %v2386_v8  ;;  %v804_v9 = vld [vmem:[#allocation7] sm:$0xff]  ;;  %v2388_v10 = vmov 0.0   ;;  %vm706_vm3 = vcmask 1043456   ;;  %s2389_s17 = smov 64  }
  0x9b   : > { %v1913_v7 = vpack.c.bf16 %v582_v5, %v581_v3  ;;  %1813 = vmatprep.mubr.msk.f32.mxu0 %vm590_vm1, %v575_v6  ;;  %1846 = vmatprep.mubr.msk.f32.mxu1 %vm2387_vm2, %v2388_v10  ;;  %v805_v11 = vld [vmem:[#allocation7 + $0x8] sm:$0xff]  ;;  %v692_v12 = vld [vmem:[%s2885_s4] sm:$0xf]  ;;  %v806_v14 = vld [vmem:[#allocation7 + $0x10] sm:$0xff]  ;;  %vm693_vm4 = vcmask 31744   ;;  %vm799_vm5 = vcmask 785408  }
  0x9c   : > { %1910 = vmatprep.subr.bf16.mxu0 %v1909_v4  ;;  %v2678_v13 = vpack.c.bf16 %v805_v11, %v804_v9  ;;  %v807_v15 = vld [vmem:[#allocation7 + $0x18] sm:$0xff]  ;;  %v576_v17 = vld [vmem:[%s2648_s22 + $0x8] sm:$0xff]  ;;  %v577_v18 = vld [vmem:[%s2648_s22 + $0x10] sm:$0xff]  ;;  %s2391_s12 = smov 96   ;;  %s2940_s2 = sld [smem:[#allocation24_spill]] }
  0x9d   : > { %1912 = vmatpush3.bf16.msra.mxu0 %v1909_v4  ;;  %v1724_v16 = vld [vmem:[%s2888_s7] ss:$0 sm:$0xff]  ;;  %v2688_v19 = vpack.c.bf16 %v807_v15, %v806_v14  ;;  %v578_v20 = vld [vmem:[%s2648_s22 + $0x18] sm:$0xff]  ;;  %v689_v22 = vld [vmem:[%s2653_s24 + $0x8] sm:$0xff]  ;;  %s2392_s21 = smov [#allocation13]  }
  0x9e   : > { %1914 = vmatprep.subr.bf16.mxu0 %v1913_v7  ;;  %896 = vrot.lane.b32.xlu0 %v1724_v16, %s2389_s17  ;;  %v688_v21 = vld [vmem:[%s2653_s24] sm:$0xff]  ;;  %v690_v23 = vld [vmem:[%s2653_s24 + $0x10] sm:$0xff]  ;;  %v691_v24 = vld [vmem:[%s2653_s24 + $0x18] sm:$0xff]  ;;  %s2390_s24 = smov 32   ;;  %s1551_s23 = sshll.u32 %s2392_s21, 4  ;;  %s1552_s23 = int_to_ptr.vmem [resolvable:$true] %s1551_s23 }
  0x9f   : > { %1925 = vmatpush3.bf16.msra.mxu1 %v2678_v13  ;;  %v814_v25 = vld [vmem:[#allocation13] sm:$0xff]  ;;  %v1714_v26 = vld [vmem:[%s2887_s6] ss:$0 sm:$0xff]  ;;  %v1254_v6 = vld [vmem:[#allocation9 + $0x8] sm:$0xff]  ;;  %s2256_s15 = scalar_lea.vmem %s1552_s23, 128  ;;  %p2263_p3 = scmp.lt.s32.totalorder %s1552_s23, %s1552_s23 }
  0xa0   : > { %1926 = vmatprep.subr.bf16.mxu1 %v2386_v8  ;;  %v1253_v16 = vld [vmem:[#allocation9] sm:$0xff]  ;;  %p2257_p8 = scmp.ne.s32.totalorder %s1552_s23, %s2256_s15  ;;  %p2264_p5 = scmp.lt.s32.totalorder %s2256_s15, %s2256_s15 }
  0xa1   : > { %1916 = vmatpush3.bf16.msra.mxu0 %v1913_v7  ;;  %v1256_v7 = vld [vmem:[#allocation9 + $0x18] sm:$0xff] }
  0xa2   : > { %1819 = vmatprep.subr.msk.mxu0 %vm706_vm3, %v692_v12  ;;  %p2941_p10 = scmp.ne.s32.totalorder %s2940_s2, 0  ;;  %p2265_p6 = por %p2264_p5, %p2263_p3 }
  0xa3   : > { %1928 = vmatpush3.bf16.msra.mxu1 %v2688_v19 }
  0xa4   : > { %1814 = vmatmul.mubr.msk.f32.vlgmr.msra.gmra.mrb[0].mxu0 %vm590_vm1, %v576_v17  ;;  %1935 = vmatprep.subr.bf16.mxu1 %v2386_v8  ;;  %v1255_v17 = vld [vmem:[#allocation9 + $0x10] sm:$0xff]  ;;  %p2258_p11 = pnand %p2257_p8, %p2941_p10 }
  0xa5   : > { %1820 = vmatpush3.msk.msra.mxu0 %vm706_vm3, %v692_v12  ;;  %1816 = vmatprep.mubr.msk.f32.mxu0 %vm590_vm1, %v577_v18  ;;  %v1258_v18 = vld [vmem:[#allocation9 + $0x28] sm:$0xff] }
  0xa6   : > { %1917 = vmatprep.subr.bf16.mxu0 %v2386_v8  ;;  %p2259_p0 = pneg %p2258_p11 }
  0xa8   : > { %1817 = vmatmul.mubr.msk.f32.gmra.mrb[2].mxu0 %vm590_vm1, %v578_v20  ;;  %v1943_v20 = vpack.c.bf16 %v1255_v17, %v1253_v16  ;;  %v1388_v17 = vld [vmem:[#allocation10 + $0x50] sm:$0xff]  ;;  %p2266_p7 = pnand %p2265_p6, %p2259_p0 }
  0xa9   : > { %1821 = vmatprep.mubr.msk.f32.mxu0 %vm693_vm4, %v688_v21 }
  0xac   : > { %1822 = vmatmul.mubr.msk.f32.vlgmr.msra.gmra.mrb[0].mxu0 %vm693_vm4, %v689_v22  ;;  %v1257_v22 = vld [vmem:[#allocation9 + $0x20] sm:$0xff] }
  0xad   : > { %1919 = vmatpush3.bf16.msra.mxu0 %v2678_v13  ;;  %1824 = vmatprep.mubr.msk.f32.mxu0 %vm693_vm4, %v690_v23  ;;  %v1259_v23 = vld [vmem:[#allocation9 + $0x30] sm:$0xff] }
  0xae   : > { %1920 = vmatprep.subr.bf16.mxu0 %v2386_v8 }
  0xb0   : > { %1825 = vmatmul.mubr.msk.f32.gmra.mrb[2].mxu0 %vm693_vm4, %v691_v24 }
  0xb1   : > { %1922 = vmatpush3.bf16.msra.mxu0 %v2688_v19  ;;  %1835 = vmatprep.mubr.msk.f32.mxu0 %vm2387_vm2, %v2388_v10 }
  0xb2   : > { %1929 = vmatprep.subr.bf16.mxu0 %v2386_v8 }
  0xb4   : > { %1836 = vmatmul.mubr.msk.f32.vlgmr.msra.gmra.mrb[4].mxu0 %vm590_vm1, %v814_v25 }
  0xb5   : > { %1931 = vmatpush3.bf16.msra.mxu0 %v2678_v13  ;;  %1857 = vmatprep.mubr.msk.f32.mxu0 %vm2387_vm2, %v2388_v10 }
  0xb6   : > { %1932 = vmatprep.subr.bf16.mxu0 %v2386_v8 }
  0xb9   : > { %1934 = vmatpush3.bf16.msra.mxu0 %v2688_v19 }
 0x110   : > { %v2716_v35 = vpop.permute.xlu0 %896 }
 0x17f   : > { %v1823_v27 = vpop.f32.mrb[0].mxu0 }
 0x180   : > { %v1981_v28 = vadd.f32 %v1823_v27, %v1714_v26  ;;  %v776_v29 = vpop.f32.mrb[1].mxu0 }
 0x181   : > { %v1982_v30 = vadd.f32 %v1714_v26, %v776_v29 }
 0x182   : > { %801 = vst.msk [vmem:[#allocation2 + $0x8] sm:$0xff] %vm799_vm5, %v1981_v28  ;;  %v1263_v28 = vlaneseq }
 0x183   : > { %800 = vst.msk [vmem:[#allocation2] sm:$0xff] %vm799_vm5, %v1982_v30  ;;  %v1826_v31 = vpop.f32.mrb[2].mxu0  ;;  %v1261_v30 = vld [vmem:[%s2890_s9] sm:$0x3] }
 0x184   : > { %v1983_v32 = vadd.f32 %v1826_v31, %v1714_v26  ;;  %v786_v33 = vpop.f32.mrb[3].mxu0  ;;  %v1264_v29 = vshrl.u32 %v1263_v28, 7 }
 0x185   : > { %v1984_v34 = vadd.f32 %v1714_v26, %v786_v33 }
 0x186   : > { %803 = vst.msk [vmem:[#allocation2 + $0x18] sm:$0xff] %vm799_vm5, %v1983_v32  ;;  %v1269_v31 = vsub.s32 1, %v1264_v29 }
 0x187   : > { %802 = vst.msk [vmem:[#allocation2 + $0x10] sm:$0xff] %vm799_vm5, %v1984_v34  ;;  %v885_v36 = vpop.f32.mrb[4].mxu0 }
 0x188   : > { %v899_v37 = vadd.f32 %v2716_v35, %v885_v36  ;;  %v1837_v38 = vpop.f32.mrb[5].mxu0  ;;  %v2748_v32 = vrot.slane %v1261_v30, %v1269_v31 }
 0x189   : > { %v928_v60 = vld [vmem:[#allocation2 + $0x8] sm:$0xff] }
 0x18a   : > { %901 = vrot.lane.b32.xlu0 %v899_v37, %s2389_s17  ;;  %v815_v39 = vld [vmem:[#allocation2] sm:$0xff]  ;;  %v1265_v37 = vsub.s32 0, %v1264_v29 }
 0x18b   : > { %v889_v40 = vadd.f32 %v885_v36, %v815_v39 }
 0x18c   : > { %v2752_v38 = vrot.slane %v1261_v30, %v1265_v37  ;;  %v2782_v37 = vld [vmem:[%s2892_s11] ss:$0 sm:$0xff] }
 0x18d   : > { %v1726_v41 = vmul.f32 -1.442695, %v889_v40 }
 0x18e   : > { %917 = vrot.lane.b32.xlu0 %v814_v25, %s2390_s24  ;;  %v1947_v25 = vpack.c.bf16 %v1259_v23, %v1257_v22  ;;  %v1392_v23 = vld [vmem:[#allocation10 + $0x70] sm:$0xff] }
 0x18f   : > { %2104 = vpow2.f32 %v1726_v41 }
 0x199   : > { %v2105_v42 = vpop.eup %2104 }
 0x19a   : > { %v893_v43 = vadd.f32 1.0, %v2105_v42 }
 0x19c   : > { %2106 = vrcp.f32 %v893_v43 }
 0x1a6   : > { %v2107_v44 = vpop.eup %2106 }
 0x1a7   : > { %v911_v51 = vsub.f32 1.0, %v2107_v44 }
 0x1fc   : > { %v902_v45 = vpop.permute.xlu0 %901 }
 0x1fd   : > { %v904_v46 = vmul.f32 %v2107_v44, %v902_v45  ;;  %v1035_v45 = vld [vmem:[#allocation2 + $0x10] sm:$0xff] }
 0x1ff   : > { %906 = vrot.lane.b32.xlu1 %v904_v46, %s2389_s17 }
 0x200   : > { %v918_v50 = vpop.permute.xlu0 %917 }
 0x201   : > { %v920_v53 = vmul.f32 %v2107_v44, %v918_v50 }
 0x271   : > { %v907_v47 = vpop.permute.xlu1 %906 }
 0x272   : > { %v909_v48 = vadd.f32 %v907_v47, %v815_v39 }
 0x274   : > { %2108 = vtanh.f32 %v909_v48 }
 0x27e   : > { %v2109_v49 = vpop.eup %2108 }
 0x27f   : > { %913 = vrot.lane.b32.xlu1 %v2109_v49, %s2391_s12 }
 0x2f1   : > { %v914_v52 = vpop.permute.xlu1 %913 }
 0x2f2   : > { %v916_v54 = vmul.f32 %v914_v52, %v911_v51 }
 0x2f4   : > { %v921_v55 = vadd.f32 %v920_v53, %v916_v54 }
 0x2f6   : > { %923 = vrot.lane.b32.xlu1 %v921_v55, %s2391_s12 }
 0x368   : > { %v924_v56 = vpop.permute.xlu1 %923 }
 0x369   : > { %926 = vst.msk [vmem:[#allocation3] sm:$0xff] %vm590_vm1, %v924_v56  ;;  %1847 = vmatmul.mubr.msk.f32.vlgmr.msra.gmra.mrb[0].mxu1 %vm590_vm1, %v924_v56  ;;  %v1379_v56 = vld [vmem:[#allocation10 + $0x8] sm:$0xff] }
 0x36a   : > { %1937 = vmatpush3.bf16.msra.mxu1 %v2678_v13  ;;  %1868 = vmatprep.mubr.msk.f32.mxu1 %vm2387_vm2, %v2388_v10 }
 0x36b   : > { %1938 = vmatprep.subr.bf16.mxu1 %v2386_v8  ;;  %v1941_v8 = vpack.c.bf16 %v1256_v7, %v1254_v6  ;;  %v1382_v6 = vld [vmem:[#allocation10 + $0x20] sm:$0xff]  ;;  %v1383_v7 = vld [vmem:[#allocation10 + $0x28] sm:$0xff] }
 0x36d   : > { %1942 = vmatprep.subr.bf16.mxu0 %v1941_v8  ;;  %v1957_v8 = vpack.c.bf16 %v1383_v7, %v1382_v6 }
 0x36e   : > { %1940 = vmatpush3.bf16.msra.mxu1 %v2688_v19  ;;  %v1260_v19 = vld [vmem:[#allocation9 + $0x38] sm:$0xff] }
 0x36f   : > { %v1945_v21 = vpack.c.bf16 %v1260_v19, %v1258_v18  ;;  %v1389_v18 = vld [vmem:[#allocation10 + $0x58] sm:$0xff] }
 0x370   : > { %v1249_v26 = vld [vmem:[#allocation3] sm:$0xff]  ;;  %v1969_v19 = vpack.c.bf16 %v1389_v18, %v1388_v17 }
 0x43c   : > { %v997_v57 = vpop.f32.mrb[0].mxu1 }
 0x43d   : > { %v1008_v58 = vadd.f32 %v997_v57, %v2716_v35  ;;  %v1848_v59 = vpop.f32.mrb[1].mxu1  ;;  %v1001_v61 = vadd.f32 %v997_v57, %v928_v60 }
 0x43f   : > { %1010 = vrot.lane.b32.xlu0 %v1008_v58, %s2389_s17  ;;  %v1728_v62 = vmul.f32 -1.442695, %v1001_v61 }
 0x441   : > { %2110 = vpow2.f32 %v1728_v62 }
 0x44b   : > { %v2111_v63 = vpop.eup %2110 }
 0x44c   : > { %v1005_v0 = vadd.f32 1.0, %v2111_v63 }
 0x44e   : > { %2112 = vrcp.f32 %v1005_v0 }
 0x458   : > { %v2113_v1 = vpop.eup %2112 }
 0x459   : > { %v1020_v11 = vsub.f32 1.0, %v2113_v1  ;;  %v1026_v13 = vmul.f32 %v2113_v1, %v921_v55  ;;  %v1378_v55 = vld [vmem:[#allocation10] sm:$0xff] }
 0x45a   : > { %v1949_v57 = vpack.c.bf16 %v1379_v56, %v1378_v55 }
 0x45c   : > { %1950 = vmatprep.subr.bf16.mxu1 %v1949_v57 }
 0x4b1   : > { %v1011_v2 = vpop.permute.xlu0 %1010 }
 0x4b2   : > { %v1013_v3 = vmul.f32 %v2113_v1, %v1011_v2  ;;  %v1380_v1 = vld [vmem:[#allocation10 + $0x10] sm:$0xff]  ;;  %v1381_v2 = vld [vmem:[#allocation10 + $0x18] sm:$0xff] }
 0x4b4   : > { %1015 = vrot.lane.b32.xlu1 %v1013_v3, %s2389_s17  ;;  %v1953_v3 = vpack.c.bf16 %v1381_v2, %v1380_v1 }
 0x526   : > { %v1016_v4 = vpop.permute.xlu1 %1015 }
 0x527   : > { %v1018_v5 = vadd.f32 %v1016_v4, %v928_v60 }
 0x529   : > { %2114 = vtanh.f32 %v1018_v5 }
 0x533   : > { %v2115_v9 = vpop.eup %2114 }
 0x534   : > { %1022 = vrot.lane.b32.xlu0 %v2115_v9, %s2391_s12  ;;  %v1384_v9 = vld [vmem:[#allocation10 + $0x30] sm:$0xff] }
 0x5a6   : > { %v1023_v12 = vpop.permute.xlu0 %1022 }
 0x5a7   : > { %v1025_v14 = vmul.f32 %v1023_v12, %v1020_v11  ;;  %v1385_v11 = vld [vmem:[#allocation10 + $0x38] sm:$0xff] }
 0x5a8   : > { %v1961_v12 = vpack.c.bf16 %v1385_v11, %v1384_v9 }
 0x5a9   : > { %v2734_v15 = vadd.f32 %v1026_v13, %v1025_v14  ;;  %v1386_v14 = vld [vmem:[#allocation10 + $0x40] sm:$0xff] }
 0x5ab   : > { %1029 = vrot.lane.b32.xlu1 %v2734_v15, %s2391_s12 }
 0x61d   : > { %v1030_v24 = vpop.permute.xlu1 %1029 }
 0x61e   : > { %1033 = vst.msk [vmem:[#allocation3 + $0x8] sm:$0xff] %vm590_vm1, %v1030_v24  ;;  %1858 = vmatmul.mubr.msk.f32.vlgmr.msra.gmra.mrb[6].mxu0 %vm590_vm1, %v1030_v24  ;;  %v1393_v24 = vld [vmem:[#allocation10 + $0x78] sm:$0xff] }
 0x61f   : > { %1944 = vmatpush1.bf16.msra.mxu0 %v1943_v20  ;;  %1349 = vmatprep.mubr.f32.mxu0 %v2388_v10  ;;  %v1390_v20 = vld [vmem:[#allocation10 + $0x60] sm:$0xff] }
 0x620   : > { %1946 = vmatprep.subr.bf16.mxu0 %v1945_v21  ;;  %v1391_v21 = vld [vmem:[#allocation10 + $0x68] sm:$0xff] }
 0x621   : > { %v1973_v22 = vpack.c.bf16 %v1391_v21, %v1390_v20 }
 0x623   : > { %1948 = vmatpush1.bf16.msra.mxu0 %v1947_v25  ;;  %v1977_v25 = vpack.c.bf16 %v1393_v24, %v1392_v23 }
 0x625   : > { %v1250_v27 = vld [vmem:[#allocation3 + $0x8] sm:$0xff] }
 0x626   : > { %1733 = vmatmul.mubr.msk.f32.vlgmr.msra.gmra.mrb[8].mxu0 %vm590_vm1, %v1249_v26 }
 0x627   : > { %1355 = vmatprep.mubr.f32.mxu0 %v2388_v10 }
 0x62a   : > { %1734 = vmatmul.mubr.msk.f32.gmra.mrb[10].mxu0 %vm590_vm1, %v1250_v27 }
 0x62b   : > { %1361 = vmatprep.mubr.f32.mxu0 %v2388_v10 }
 0x6f1   : > { %v1104_v33 = vpop.f32.mrb[6].mxu0 }
 0x6f2   : > { %v1115_v34 = vadd.f32 %v1104_v33, %v2716_v35  ;;  %v1859_v36 = vpop.f32.mrb[7].mxu0  ;;  %v1108_v46 = vadd.f32 %v1104_v33, %v1035_v45 }
 0x6f4   : > { %1117 = vrot.lane.b32.xlu0 %v1115_v34, %s2389_s17  ;;  %v1730_v47 = vmul.f32 -1.442695, %v1108_v46 }
 0x6f6   : > { %2116 = vpow2.f32 %v1730_v47 }
 0x6f9   : > { %v1351_v39 = vpop.f32.mrb[8].mxu0 }
 0x6fa   : > { %v1352_v40 = vadd.f32 %v1351_v39, %v2752_v38  ;;  %v1353_v41 = vpop.f32.mrb[9].mxu0 }
 0x6fb   : > { %v1354_v0 = vadd.f32 %v1353_v41, %v2748_v32 }
 0x6fc   : > { %1510 = vst [vmem:[%s2655_s27] sm:$0xff] %v1352_v40 }
 0x6fd   : > { %v1357_v42 = vpop.f32.mrb[10].mxu0  ;;  %v1374_v4 = vmax.f32 %v1354_v0, 0.0 }
 0x6fe   : > { %v1358_v43 = vadd.f32 %v1357_v42, %v2752_v38  ;;  %v2757_v44 = vpop.f32.mrb[11].mxu0 }
 0x700   : > { %1512 = vst [vmem:[%s2655_s27 + $0x10] sm:$0xff] %v1358_v43  ;;  %v2117_v48 = vpop.eup %2116 }
 0x701   : > { %v1112_v49 = vadd.f32 1.0, %v2117_v48 }
 0x703   : > { %2118 = vrcp.f32 %v1112_v49 }
 0x70d   : > { %v2119_v50 = vpop.eup %2118 }
 0x70e   : > { %v1127_v59 = vsub.f32 1.0, %v2119_v50  ;;  %v1133_v61 = vmul.f32 %v2119_v50, %v2734_v15  ;;  %v1387_v15 = vld [vmem:[#allocation10 + $0x48] sm:$0xff] }
 0x70f   : > { %v1965_v16 = vpack.c.bf16 %v1387_v15, %v1386_v14 }
 0x766   : > { %v1118_v51 = vpop.permute.xlu0 %1117 }
 0x767   : > { %v1120_v52 = vmul.f32 %v2119_v50, %v1118_v51  ;;  %v1142_v50 = vld [vmem:[#allocation2 + $0x18] sm:$0xff] }
 0x769   : > { %1122 = vrot.lane.b32.xlu1 %v1120_v52, %s2389_s17 }
 0x7db   : > { %v1123_v53 = vpop.permute.xlu1 %1122 }
 0x7dc   : > { %v1125_v54 = vadd.f32 %v1123_v53, %v1035_v45 }
 0x7de   : > { %2120 = vtanh.f32 %v1125_v54 }
 0x7e8   : > { %v2121_v58 = vpop.eup %2120 }
 0x7e9   : > { %1129 = vrot.lane.b32.xlu0 %v2121_v58, %s2391_s12 }
 0x85b   : > { %v1130_v60 = vpop.permute.xlu0 %1129 }
 0x85c   : > { %v1132_v62 = vmul.f32 %v1130_v60, %v1127_v59 }
 0x85e   : > { %v2763_v63 = vadd.f32 %v1133_v61, %v1132_v62 }
 0x860   : > { %1136 = vrot.lane.b32.xlu1 %v2763_v63, %s2391_s12 }
 0x8d2   : > { %v1137_v5 = vpop.permute.xlu1 %1136 }
 0x8d3   : > { %1140 = vst.msk [vmem:[#allocation3 + $0x10] sm:$0xff] %vm590_vm1, %v1137_v5  ;;  %1869 = vmatmul.mubr.msk.f32.vlgmr.msra.gmra.mrb[2].mxu1 %vm590_vm1, %v1137_v5 }
 0x8d4   : > { %1952 = vmatpush3.bf16.msra.mxu1 %v1949_v57  ;;  %1903 = vmatprep.mubr.f32.mxu1 %v1374_v4 }
 0x8d5   : > { %1954 = vmatprep.subr.bf16.mxu1 %v1953_v3 }
 0x8d8   : > { %1956 = vmatpush3.bf16.msra.mxu1 %v1953_v3 }
 0x8d9   : > { %1958 = vmatprep.subr.bf16.mxu1 %v1957_v8 }
 0x8da   : > { %v1251_v13 = vld [vmem:[#allocation3 + $0x10] sm:$0xff] }
 0x8db   : > { %1735 = vmatmul.mubr.msk.f32.gmra.mrb[12].mxu0 %vm590_vm1, %v1251_v13 }
 0x8dc   : > { %1960 = vmatpush3.bf16.msra.mxu1 %v1957_v8  ;;  %1367 = vmatprep.mubr.f32.mxu0 %v2388_v10  ;;  %v1360_v10 = vadd.f32 %v2757_v44, %v2748_v32 }
 0x8dd   : > { %1962 = vmatprep.subr.bf16.mxu1 %v1961_v12 }
 0x8de   : > { %v1375_v26 = vmax.f32 %v1360_v10, 0.0 }
 0x8e0   : > { %1964 = vmatpush3.bf16.msra.mxu1 %v1961_v12 }
 0x8e1   : > { %1966 = vmatprep.subr.bf16.mxu1 %v1965_v16 }
 0x8e4   : > { %1968 = vmatpush3.bf16.msra.mxu1 %v1965_v16 }
 0x8e5   : > { %1970 = vmatprep.subr.bf16.mxu1 %v1969_v19 }
 0x8e8   : > { %1972 = vmatpush3.bf16.msra.mxu1 %v1969_v19 }
 0x8e9   : > { %1974 = vmatprep.subr.bf16.mxu1 %v1973_v22 }
 0x8ec   : > { %1976 = vmatpush3.bf16.msra.mxu1 %v1973_v22 }
 0x8ed   : > { %1978 = vmatprep.subr.bf16.mxu1 %v1977_v25 }
 0x8f0   : > { %1980 = vmatpush3.bf16.msra.mxu1 %v1977_v25 }
 0x8f3   : > { %1904 = vmatmul.mubr.f32.vlgmr.msra.gmra.mrb[4].mxu1 %v1375_v26 }
 0x9a6   : > { %v1211_v27 = vpop.f32.mrb[2].mxu1 }
 0x9a7   : > { %v1222_v28 = vadd.f32 %v1211_v27, %v2716_v35  ;;  %v1870_v29 = vpop.f32.mrb[3].mxu1  ;;  %v1215_v51 = vadd.f32 %v1211_v27, %v1142_v50 }
 0x9a9   : > { %1224 = vrot.lane.b32.xlu0 %v1222_v28, %s2389_s17  ;;  %v1732_v52 = vmul.f32 -1.442695, %v1215_v51 }
 0x9ae   : > { %v1363_v30 = vpop.f32.mrb[12].mxu0 }
 0x9af   : > { %v1364_v31 = vadd.f32 %v1363_v30, %v2752_v38  ;;  %v1365_v33 = vpop.f32.mrb[13].mxu0 }
 0x9b0   : > { %v1366_v34 = vadd.f32 %v1365_v33, %v2748_v32 }
 0x9b1   : > { %1514 = vst [vmem:[%s2655_s27 + $0x20] sm:$0xff] %v1364_v31 }
 0x9b2   : > { %v1376_v36 = vmax.f32 %v1366_v34, 0.0 }
 0x9b4   : > { %1906 = vmatprep.mubr.f32.mxu1 %v1376_v36 }
 0x9c6   : > { %v1905_v39 = vpop.f32.mrb[4].mxu1 }
 0x9c7   : > { %v1473_v35 = vadd.f32 %v1905_v39, %v2782_v37  ;;  %v1467_v40 = vpop.f32.mrb[5].mxu1 }
 0x9c8   : > { %v1468_v41 = vadd.f32 %v2782_v37, %v1467_v40 }
 0x9c9   : > { %v1739_v42 = vmul.f32 -1.442695, %v1473_v35 }
 0x9ca   : > { %v1738_v43 = vmul.f32 -1.442695, %v1468_v41 }
 0x9cb   : > { %2122 = vpow2.f32 %v1739_v42 }
 0x9cc   : > { %2124 = vpow2.f32 %v1738_v43 }
 0x9d5   : > { %v2123_v44 = vpop.eup %2122 }
 0x9d6   : > { %v2125_v45 = vpop.eup %2124  ;;  %v1499_v46 = vadd.f32 1.0, %v2123_v44 }
 0x9d7   : > { %v1498_v47 = vadd.f32 1.0, %v2125_v45 }
 0x9d8   : > { %2126 = vrcp.f32 %v1499_v46 }
 0x9d9   : > { %2128 = vrcp.f32 %v1498_v47 }
 0x9da   : > { %2130 = vpow2.f32 %v1732_v52 }
 0x9e2   : > { %v2127_v48 = vpop.eup %2126 }
 0x9e3   : > { %v2129_v49 = vpop.eup %2128  ;;  %1513 = vst [vmem:[%s2655_s27 + $0x18] sm:$0xff] %v2127_v48 }
 0x9e4   : > { %1511 = vst [vmem:[%s2655_s27 + $0x8] sm:$0xff] %v2129_v49  ;;  %v2131_v53 = vpop.eup %2130 }
 0x9e5   : > { %v1219_v54 = vadd.f32 1.0, %v2131_v53 }
 0x9e7   : > { %2132 = vrcp.f32 %v1219_v54 }
 0x9f1   : > { %v2133_v55 = vpop.eup %2132 }
 0x9f2   : > { %v1234_v61 = vsub.f32 1.0, %v2133_v55  ;;  %v1240_v0 = vmul.f32 %v2133_v55, %v2763_v63 }
 0xa1b   : > { %v1225_v56 = vpop.permute.xlu0 %1224 }
 0xa1c   : > { %v1227_v57 = vmul.f32 %v2133_v55, %v1225_v56 }
 0xa1e   : > { %1229 = vrot.lane.b32.xlu1 %v1227_v57, %s2389_s17 }
 0xa90   : > { %v1230_v58 = vpop.permute.xlu1 %1229 }
 0xa91   : > { %v1232_v59 = vadd.f32 %v1230_v58, %v1142_v50 }
 0xa93   : > { %2134 = vtanh.f32 %v1232_v59 }
 0xa9d   : > { %v2135_v60 = vpop.eup %2134 }
 0xa9e   : > { %1236 = vrot.lane.b32.xlu0 %v2135_v60, %s2391_s12 }
 0xb10   : > { %v1237_v62 = vpop.permute.xlu0 %1236 }
 0xb11   : > { %v1239_v1 = vmul.f32 %v1237_v62, %v1234_v61 }
 0xb13   : > { %v1241_v2 = vadd.f32 %v1240_v0, %v1239_v1 }
 0xb15   : > { %1243 = vrot.lane.b32.xlu1 %v1241_v2, %s2391_s12 }
 0xb87   : > { %v1244_v3 = vpop.permute.xlu1 %1243 }
 0xb88   : > { %1247 = vst.msk [vmem:[#allocation3 + $0x18] sm:$0xff] %vm590_vm1, %v1244_v3  ;;  %1248 = vst.msk [vmem:[#allocation13] sm:$0xff] %vm590_vm1, %v1244_v3 }
 0xb8f   : > { %v1252_v4 = vld [vmem:[#allocation3 + $0x18] sm:$0xff] }
 0xb90   : > { %1736 = vmatmul.mubr.msk.f32.gmra.mrb[14].mxu0 %vm590_vm1, %v1252_v4 }
 0xc63   : > { %v1369_v5 = vpop.f32.mrb[14].mxu0 }
 0xc64   : > { %v1370_v6 = vadd.f32 %v1369_v5, %v2752_v38  ;;  %v1371_v7 = vpop.f32.mrb[15].mxu0 }
 0xc65   : > { %v1372_v8 = vadd.f32 %v1371_v7, %v2748_v32 }
 0xc66   : > { %1516 = vst [vmem:[%s2655_s27 + $0x30] sm:$0xff] %v1370_v6 }
 0xc67   : > { %v1377_v63 = vmax.f32 %v1372_v8, 0.0 }
 0xc69   : > { %1907 = vmatmul.mubr.f32.gmra.mrb[6].mxu1 %v1377_v63 }
 0xc6a   : > { %2269 = shalt.err (!%p2266_p7)
}
 0xc6b   : > { %s2942_s30 = sld [smem:[#allocation31_spill]] }
 0xc71   : > { %s2943_s17 = smov %s2942_s30  ;;  %s2270_s22 = scalar_lea.hbm %s2942_s30, 128 }
 0xc72   : > { %p2271_p9 = scmp.ne.s32.totalorder %s2943_s17, %s2270_s22  ;;  %p2276_p1 = scmp.lt.u32.totalorder %s2270_s22, %s2943_s17 }
 0xc74   : > { %p2272_p12 = pnand %p2271_p9, %p2941_p10 }
 0xc76   : > { %p2273_p2 = pneg %p2272_p12 }
 0xc78   : > { %p2278_p13 = pnand %p2276_p1, %p2273_p2 }
 0xc7a   : > { %2281 = shalt.err (!%p2278_p13)
}
 0xc7b   : > { %2007 = dma.vmem_to_hbm [thread:$0]  (%p2941_p10), %s1552_s23, 128, %s2943_s17, [#allocation14]  }
 0xc7c   : > { %s2944_s20 = sld [smem:[#allocation26_spill]]  ;;  %s1751_s21 = sshll.u32 %s2368_s28, 10 }
 0xc7d   : > { %s1535_s23 = sshll.u32 %s2655_s27, 4  ;;  %s2945_s13 = sld [smem:[#allocation30_spill]]  ;;  %s2825_s23 = int_to_ptr.vmem [resolvable:$true] %s1535_s23 }
 0xc7e   : > { %s2831_s22 = scalar_lea.sflag [#allocation6], %s544_s16  ;;  %s2282_s14 = scalar_lea.vmem %s2825_s23, 1024 }
 0xc7f   : > { %p2283_p4 = scmp.ne.s32.totalorder %s2825_s23, %s2282_s14  ;;  %s2393_s28 = smov [#allocation12]  }
 0xc80   : > { %s2286_s24 = sshll.u32 %s2393_s28, 4  ;;  %s2287_s24 = int_to_ptr.vmem [resolvable:$false] %s2286_s24 }
 0xc81   : > { %s2288_s12 = scalar_lea.vmem %s2287_s24, 2048  ;;  %p2289_p3 = scmp.lt.s32.totalorder %s2825_s23, %s2287_s24 }
 0xc82   : > { %p2946_p8 = scmp.ne.s32.totalorder %s2944_s20, 0  ;;  %p2290_p5 = scmp.lt.s32.totalorder %s2288_s12, %s2282_s14 }
 0xc83   : > { %s2823_s30 = scalar_lea.hbm %s2945_s13, %s1751_s21 }
 0xc84   : > { %p2284_p11 = pnand %p2283_p4, %p2946_p8  ;;  %p2291_p6 = por %p2290_p5, %p2289_p3 }
 0xc86   : > { %p2285_p0 = pneg %p2284_p11 }
 0xc88   : > { %p2292_p7 = pnand %p2291_p6, %p2285_p0 }
 0xd3c   : > { %v1908_v32 = vpop.f32.mrb[6].mxu1 }
 0xd3d   : > { %v1483_v38 = vadd.f32 %v1908_v32, %v2782_v37  ;;  %v1477_v9 = vpop.f32.mrb[7].mxu1 }
 0xd3e   : > { %v1478_v11 = vadd.f32 %v2782_v37, %v1477_v9 }
 0xd3f   : > { %v1741_v12 = vmul.f32 -1.442695, %v1483_v38 }
 0xd40   : > { %v1740_v13 = vmul.f32 -1.442695, %v1478_v11 }
 0xd41   : > { %2136 = vpow2.f32 %v1741_v12 }
 0xd42   : > { %2138 = vpow2.f32 %v1740_v13 }
 0xd4b   : > { %v2137_v14 = vpop.eup %2136 }
 0xd4c   : > { %v2139_v15 = vpop.eup %2138  ;;  %v1501_v16 = vadd.f32 1.0, %v2137_v14 }
 0xd4d   : > { %v1500_v17 = vadd.f32 1.0, %v2139_v15 }
 0xd4e   : > { %2140 = vrcp.f32 %v1501_v16 }
 0xd4f   : > { %2142 = vrcp.f32 %v1500_v17 }
 0xd58   : > { %v2141_v18 = vpop.eup %2140 }
 0xd59   : > { %v2143_v19 = vpop.eup %2142  ;;  %1517 = vst [vmem:[%s2655_s27 + $0x38] sm:$0xff] %v2141_v18 }
 0xd5a   : > { %1515 = vst [vmem:[%s2655_s27 + $0x28] sm:$0xff] %v2143_v19 }
 0xd5b   : > { %2295 = shalt.err (!%p2292_p7)
}
 0xd5c   : > { %s2296_s16 = scalar_lea.hbm %s2823_s30, 1024  ;;  %s2300_s18 = scalar_lea.hbm %s2945_s13, 4096 }
 0xd5d   : > { %p2297_p9 = scmp.ne.s32.totalorder %s2823_s30, %s2296_s16  ;;  %p2301_p1 = scmp.lt.u32.totalorder %s2823_s30, %s2945_s13 }
 0xd5e   : > { %p2302_p13 = scmp.lt.u32.totalorder %s2300_s18, %s2296_s16  ;;  %p2304_p11 = scmp.lt.u32.totalorder %s2296_s16, %s2823_s30 }
 0xd5f   : > { %p2298_p12 = pnand %p2297_p9, %p2946_p8 }
 0xd60   : > { %p2303_p4 = por %p2302_p13, %p2301_p1 }
 0xd61   : > { %p2299_p2 = pneg %p2298_p12 }
 0xd62   : > { %p2305_p0 = por %p2304_p11, %p2303_p4 }
 0xd64   : > { %p2306_p3 = pnand %p2305_p0, %p2299_p2 }
 0xd66   : > { %2309 = shalt.err (!%p2306_p3)
}
 0xd67   : > { %s2394_s15 = smov 256   ;;  %s2395_s25 = smov 16  }
 0xd68   : > { %2005 = dma.vmem_to_hbm [thread:$0]  (%p2946_p8), %s2825_s23, 1024, %s2823_s30, %s2831_s22, %s2394_s15, %s2394_s15, %s2395_s25  }
 0xd69   : > { %2347 = dma.done.wait (%p2941_p10), [#allocation14], 128  }
 0xd6a   : > { %2349 = vsyncadd (%p2941_p10), [#allocation14], 4294967168 }
 0xd6b PF: > { %s2947_s14 = sld [smem:[#allocation23_spill]]  ;;  %s2948_s28 = sld [smem:[#allocation20_spill]] }
 0xd6c   : > { %s2949_s24 = sld [smem:[#allocation27_spill]] }
 0xd71   : > { %p2038_p5 = scmp.ge.s32.totalorder %s2947_s14, 2  ;;  %s1567_s12 = sand.u32 1, %s2948_s28  }
 0xd72   : > { %p2950_p6 = scmp.ne.s32.totalorder %s2949_s24, 0  ;;  %s1568_s16 = scalar_lea.sflag [#allocation6], %s1567_s12 }
 0xd74   : > { %p2025_p7 = pnand %p2038_p5, %p2950_p6 }
 0xd76   : > { %2351 = dma.done.wait (!%p2025_p7), %s1568_s16, 1024  }
 0xd77   : > { %2353 = vsyncadd (!%p2025_p7), %s1568_s16, 4294966272  ;;  %s31_s30 = sadd.s32 1, %s2947_s14   ;;  %s2951_s20 = sld [smem:[#allocation21_spill]] }
 0xd78   : > { %p28_p9 = scmp.ge.s32.totalorder %s31_s30, 6   ;;  %s2952_s27 = sld [smem:[#allocation28_spill]] }
 0xd79   : > { %s2953_s28 = sld [smem:[#allocation22_spill]]  ;;  %s2954_s29 = sld [smem:[#allocation25_spill]] }
 0xd7a   : > { %s2955_s25 = smov %s2360_s26  ;;  %30 = sbr.rel (!%p28_p9) target bundleno = 12 (0xc), region = 143 }
 0xd7d   : > { %s2956_s26 = smov %s2951_s20 }
 0xd81   :  { %1573 = vsyncpa [#allocation5], 1 }
 0xd82   :  { %1575 = vsyncpa [#allocation5 + $0x1], 1 }
 0xd83   :  { %1576 = vsyncpa [#allocation8], 1 }
 0xd84   :  { %1577 = vsyncpa [#allocation11], 1 }
 0xd85   :  { %1578 = vsyncpa [#allocation6], 1 }
 0xd86   :  { %1580 = vsyncpa [#allocation6 + $0x1], 1 }
 0xd87   :  { %1581 = vsyncpa [#allocation14], 1 }

</bundles_post_ra>
